<compile_context>
chip_gen: v7x
topology: tpu7x:2x2x1
jax: 0.10.0
libtpu: 0.0.40
codegen_flags: <defaults>
</compile_context>

<pallas_src>
import functools
import math

import jax
import jax.numpy as jnp
from jax.experimental import pallas as pl
from jax.experimental.pallas import tpu as pltpu

EPS = 1e-5


# ----------------------------- shared math helper -----------------------------
def _layernorm(z, g, b):
    mu = jnp.mean(z, axis=-1, keepdims=True)
    var = jnp.mean(jnp.square(z - mu), axis=-1, keepdims=True)
    return (z - mu) * jax.lax.rsqrt(var + EPS) * g + b


# ------------------------------- fused kernels ---------------------------------
def _branch_kernel(
    x_ref,                                   # (RB, E)  activations, batch-major rows
    l1w_ref, l1b_ref,                        # (1,E,E)/(1,1,E) per-branch linear1
    l2w_ref, l2b_ref,                        # (1,E,E)/(1,1,E) per-branch linear2
    n1g_ref, n1b_ref,                        # wrapper norm1
    n2g_ref, n2b_ref,                        # wrapper norm2
    n3g_ref, n3b_ref,                        # wrapper norm3
    wq_ref, bq_ref, wk_ref, bk_ref, wv_ref, bv_ref,   # attention in-proj (split)
    wo_ref, bo_ref,                          # attention out-proj
    e1g_ref, e1b_ref, e2g_ref, e2b_ref,      # encoder-layer LayerNorms
    f1w_ref, f1b_ref, f2w_ref, f2b_ref,      # feed-forward
    o_ref,                                   # (1, RB, E) per-branch output
    *, S, NB, H,
):
    """One grid step = one branch x one batch-block; everything fused in VMEM."""
    E = x_ref.shape[-1]
    Dh = E // H
    scale = 1.0 / math.sqrt(Dh)
    f32 = jnp.float32

    def matmul(a, w_ref, b_ref):
        return jnp.dot(a, w_ref[...], preferred_element_type=f32) + b_ref[...]

    x = x_ref[...].astype(f32)

    # ---- stage 1: branch linear1 + residual + norm1 ----
    h0 = jnp.dot(x, l1w_ref[0], preferred_element_type=f32) + l1b_ref[0]
    h0 = _layernorm(h0 + x, n1g_ref[...], n1b_ref[...])

    # ---- shared encoder layer: multi-head self-attention ----
    q = matmul(h0, wq_ref, bq_ref)
    k = matmul(h0, wk_ref, bk_ref)
    v = matmul(h0, wv_ref, bv_ref)

    batch_rows = []
    for n in range(NB):                       # static unroll over batch-block
        rs = slice(n * S, (n + 1) * S)
        qn, kn, vn = q[rs], k[rs], v[rs]
        heads = []
        for h in range(H):                    # static unroll over heads
            cs = slice(h * Dh, (h + 1) * Dh)
            qh = qn[:, cs] * scale
            kh = kn[:, cs]
            vh = vn[:, cs]
            sc = jax.lax.dot_general(qh, kh, (((1,), (1,)), ((), ())),
                                     preferred_element_type=f32)
            m = jnp.max(sc, axis=-1, keepdims=True)
            p = jnp.exp(sc - m)
            # keep exact reciprocal to hold 1e-3 tolerance vs the f32 reference
            p = p * pl.reciprocal(jnp.sum(p, axis=-1, keepdims=True), approx=False)
            heads.append(jnp.dot(p, vh, preferred_element_type=f32))
        batch_rows.append(jnp.concatenate(heads, axis=-1))
    attn = batch_rows[0] if NB == 1 else jnp.concatenate(batch_rows, axis=0)
    attn = matmul(attn, wo_ref, bo_ref)

    h1 = _layernorm(h0 + attn, e1g_ref[...], e1b_ref[...])

    # ---- shared encoder layer: fused feed-forward (ff1 + relu + ff2) ----
    ff = jnp.maximum(matmul(h1, f1w_ref, f1b_ref), 0.0)
    ff = matmul(ff, f2w_ref, f2b_ref)
    enc = _layernorm(h1 + ff, e2g_ref[...], e2b_ref[...])

    # ---- stage 2 wrapper norm + stage 3 branch linear2 ----
    h2 = _layernorm(h0 + enc, n2g_ref[...], n2b_ref[...])
    y = jnp.dot(h2, l2w_ref[0], preferred_element_type=f32) + l2b_ref[0]
    y = _layernorm(y + h2, n3g_ref[...], n3b_ref[...])

    o_ref[0] = y.astype(o_ref.dtype)


def _sum_ln_kernel(br_ref, g_ref, b_ref, o_ref, *, n_branch):
    # sum of the 5 branch outputs + final LayerNorm
    total = br_ref[0].astype(jnp.float32)
    for i in range(1, n_branch):
        total = total + br_ref[i]
    o_ref[...] = _layernorm(total, g_ref[...], b_ref[...]).astype(o_ref.dtype)


# ------------------------------ pallas forward ----------------------------------
def transformer_encoder_forward(src, params, nhead, *, batch_block=None):
    S, N, E = src.shape
    enc = params['enc']
    Fdim = enc['ff1_w'].shape[1]
    n_branch = params['lin1_w'].shape[0]

    # batch-major flattened layout: row = n*S + s (each sequence contiguous)
    x = jnp.transpose(src, (1, 0, 2)).reshape(N * S, E)

    NB = N if batch_block is None else max(1, min(batch_block, N))
    assert N % NB == 0, "batch_block must divide the batch size"
    RB = NB * S
    grid = (n_branch, N // NB)

    branch = lambda i, j: (i, 0, 0)     # per-branch stacked weights
    shared = lambda i, j: (0, 0)        # shared (resident) encoder weights
    rows = lambda i, j: (j, 0)          # activation row blocks

    # split the attention in-projection outside the kernel (free XLA slices)
    wq, wk, wv = jnp.split(enc['in_w'], 3, axis=1)
    bq, bk, bv = jnp.split(enc['in_b'], 3, axis=1)

    branch_out = pl.pallas_call(
        functools.partial(_branch_kernel, S=S, NB=NB, H=nhead),
        grid=grid,
        out_shape=jax.ShapeDtypeStruct((n_branch, N * S, E), src.dtype),
        in_specs=[
            pl.BlockSpec((RB, E), rows),                    # x
            pl.BlockSpec((1, E, E), branch),                # lin1_w
            pl.BlockSpec((1, 1, E), branch),                # lin1_b
            pl.BlockSpec((1, E, E), branch),                # lin2_w
            pl.BlockSpec((1, 1, E), branch),                # lin2_b
        ]
        + [pl.BlockSpec((1, E), shared)] * 6                # norm1/2/3 gamma, beta
        + [
            pl.BlockSpec((E, E), shared), pl.BlockSpec((1, E), shared),        # wq, bq
            pl.BlockSpec((E, E), shared), pl.BlockSpec((1, E), shared),        # wk, bk
            pl.BlockSpec((E, E), shared), pl.BlockSpec((1, E), shared),        # wv, bv
            pl.BlockSpec((E, E), shared), pl.BlockSpec((1, E), shared),        # wo, bo
            pl.BlockSpec((1, E), shared), pl.BlockSpec((1, E), shared),        # enc ln1
            pl.BlockSpec((1, E), shared), pl.BlockSpec((1, E), shared),        # enc ln2
            pl.BlockSpec((E, Fdim), shared), pl.BlockSpec((1, Fdim), shared),  # ff1
            pl.BlockSpec((Fdim, E), shared), pl.BlockSpec((1, E), shared),     # ff2
        ],
        out_specs=pl.BlockSpec((1, RB, E), lambda i, j: (i, j, 0)),
        compiler_params=pltpu.CompilerParams(
            dimension_semantics=("parallel", "parallel"),
            vmem_limit_bytes=32 * 1024 * 1024,
        ),
    )(
        x,
        params['lin1_w'], params['lin1_b'], params['lin2_w'], params['lin2_b'],
        params['norm1_g'], params['norm1_b'],
        params['norm2_g'], params['norm2_b'],
        params['norm3_g'], params['norm3_b'],
        wq, bq, wk, bk, wv, bv,
        enc['out_w'], enc['out_b'],
        enc['ln1_g'], enc['ln1_b'], enc['ln2_g'], enc['ln2_b'],
        enc['ff1_w'], enc['ff1_b'], enc['ff2_w'], enc['ff2_b'],
    )

    y = pl.pallas_call(
        functools.partial(_sum_ln_kernel, n_branch=n_branch),
        grid=(N // NB,),
        out_shape=jax.ShapeDtypeStruct((N * S, E), src.dtype),
        in_specs=[
            pl.BlockSpec((n_branch, RB, E), lambda j: (0, j, 0)),
            pl.BlockSpec((1, E), lambda j: (0, 0)),
            pl.BlockSpec((1, E), lambda j: (0, 0)),
        ],
        out_specs=pl.BlockSpec((RB, E), lambda j: (j, 0)),
        compiler_params=pltpu.CompilerParams(
            dimension_semantics=("parallel",),
            vmem_limit_bytes=32 * 1024 * 1024,
        ),
    )(branch_out, params['norm_g'], params['norm_b'])

    return jnp.transpose(y.reshape(N, S, E), (1, 0, 2))


# --------------------------- pure-JAX reference fwd -----------------------------
def transformer_encoder_reference(src, params, nhead):
    S, N, E = src.shape
    Dh = E // nhead
    enc = params['enc']
    x = src.reshape(S * N, E)                      # (S, N) row-major (torch layout)

    def mha(h):
        qkv = h @ enc['in_w'] + enc['in_b']
        q, k, v = jnp.split(qkv, 3, axis=-1)

        def heads(t):
            return t.reshape(S, N, nhead, Dh).transpose(1, 2, 0, 3)  # (N,H,S,Dh)

        q, k, v = heads(q), heads(k), heads(v)
        s = jnp.einsum('nhqd,nhkd->nhqk', q / math.sqrt(Dh), k)
        p = jax.nn.softmax(s, axis=-1)
        o = jnp.einsum('nhqk,nhkd->nhqd', p, v)
        o = o.transpose(2, 0, 1, 3).reshape(S * N, E)
        return o @ enc['out_w'] + enc['out_b']

    def enc_layer(h):
        a = mha(h)
        h1 = _layernorm(h + a, enc['ln1_g'], enc['ln1_b'])
        ff = jnp.maximum(h1 @ enc['ff1_w'] + enc['ff1_b'], 0.0)
        ff = ff @ enc['ff2_w'] + enc['ff2_b']
        return _layernorm(h1 + ff, enc['ln2_g'], enc['ln2_b'])

    outs = []
    for i in range(params['lin1_w'].shape[0]):
        h0 = _layernorm(x @ params['lin1_w'][i] + params['lin1_b'][i] + x,
                        params['norm1_g'], params['norm1_b'])
        h2 = _layernorm(h0 + enc_layer(h0), params['norm2_g'], params['norm2_b'])
        outs.append(_layernorm(h2 @ params['lin2_w'][i] + params['lin2_b'][i] + h2,
                               params['norm3_g'], params['norm3_b']))
    total = outs[0]
    for o in outs[1:]:
        total = total + o
    return _layernorm(total, params['norm_g'], params['norm_b']).reshape(S, N, E)


# ------------------------------- parameter init ---------------------------------
def init_params(key, E, F, n_parallel=5):
    keys = iter(jax.random.split(key, 64))

    def lin(d_in, d_out):
        bound = 1.0 / math.sqrt(d_in)
        w = jax.random.uniform(next(keys), (d_in, d_out), jnp.float32, -bound, bound)
        b = jax.random.uniform(next(keys), (1, d_out), jnp.float32, -bound, bound)
        return w, b

    l1 = [lin(E, E) for _ in range(n_parallel)]
    l2 = [lin(E, E) for _ in range(n_parallel)]
    params = dict(
        lin1_w=jnp.stack([w for w, _ in l1]),
        lin1_b=jnp.stack([b for _, b in l1]),
        lin2_w=jnp.stack([w for w, _ in l2]),
        lin2_b=jnp.stack([b for _, b in l2]),
    )
    for name in ('norm', 'norm1', 'norm2', 'norm3'):
        params[name + '_g'] = jnp.ones((1, E), jnp.float32)
        params[name + '_b'] = jnp.zeros((1, E), jnp.float32)

    in_w, in_b = lin(E, 3 * E)
    out_w, out_b = lin(E, E)
    ff1_w, ff1_b = lin(E, F)
    ff2_w, ff2_b = lin(F, E)
    params['enc'] = dict(
        in_w=in_w, in_b=in_b, out_w=out_w, out_b=out_b,
        ln1_g=jnp.ones((1, E), jnp.float32), ln1_b=jnp.zeros((1, E), jnp.float32),
        ln2_g=jnp.ones((1, E), jnp.float32), ln2_b=jnp.zeros((1, E), jnp.float32),
        ff1_w=ff1_w, ff1_b=ff1_b, ff2_w=ff2_w, ff2_b=ff2_b,
    )
    return params


# ------------------------------------ main ---------------------------------------
if __name__ == "__main__":
    S, N, E, H, F = 8, 2, 32, 4, 64      # seq, batch, d_model, nhead, dim_feedforward
    key = jax.random.PRNGKey(0)
    kp, kx = jax.random.split(key)
    params = init_params(kp, E, F)
    src = jax.random.normal(kx, (S, N, E), jnp.float32)

    pallas_fwd = jax.jit(lambda s: transformer_encoder_forward(s, params, H))
    out = jax.block_until_ready(pallas_fwd(src))

    ref = transformer_encoder_reference(src, params, H)
    assert out.shape == (S, N, E)
    max_err = float(jnp.max(jnp.abs(out - ref)))
    assert jnp.allclose(out, ref, atol=1e-3, rtol=1e-3), f"mismatch: max_err={max_err}"
    print("KERNEL_OK")
</pallas_src>

<mosaic_0001>
module attributes {stable_mosaic.version = 11 : i64} {
  func.func @_sum_ln_kernel(%arg0: i32, %arg1: memref<5x16x32xf32, #tpu.memory_space<vmem>>, %arg2: memref<1x32xf32, #tpu.memory_space<vmem>>, %arg3: memref<1x32xf32, #tpu.memory_space<vmem>>, %arg4: memref<16x32xf32, #tpu.memory_space<vmem>>) attributes {dimension_semantics = [#tpu.dimension_semantics<parallel>], iteration_bounds = array<i64: 1>, scalar_prefetch = 0 : i64, scratch_operands = 0 : i64, tpu.core_type = #tpu.core_type<tc>, window_params = [{transform_indices = @transform_0, window_bounds = array<i64: 5, 16, 32>}, {pipeline_mode = #tpu.pipeline_mode<synchronous>, transform_indices = @transform_1, window_bounds = array<i64: 1, 32>}, {pipeline_mode = #tpu.pipeline_mode<synchronous>, transform_indices = @transform_2, window_bounds = array<i64: 1, 32>}, {transform_indices = @transform_3, window_bounds = array<i64: 16, 32>}]} {
    %c0 = arith.constant 0 : index
    %c0_0 = arith.constant 0 : index
    %c0_1 = arith.constant 0 : index
    %0 = vector.load %arg1[%c0, %c0_0, %c0_1] : memref<5x16x32xf32, #tpu.memory_space<vmem>>, vector<1x16x32xf32>
    %1 = vector.shape_cast %0 : vector<1x16x32xf32> to vector<16x32xf32>
    %c1 = arith.constant 1 : index
    %c0_2 = arith.constant 0 : index
    %c0_3 = arith.constant 0 : index
    %2 = vector.load %arg1[%c1, %c0_2, %c0_3] : memref<5x16x32xf32, #tpu.memory_space<vmem>>, vector<1x16x32xf32>
    %3 = vector.shape_cast %2 : vector<1x16x32xf32> to vector<16x32xf32>
    %4 = arith.addf %1, %3 : vector<16x32xf32>
    %c2 = arith.constant 2 : index
    %c0_4 = arith.constant 0 : index
    %c0_5 = arith.constant 0 : index
    %5 = vector.load %arg1[%c2, %c0_4, %c0_5] : memref<5x16x32xf32, #tpu.memory_space<vmem>>, vector<1x16x32xf32>
    %6 = vector.shape_cast %5 : vector<1x16x32xf32> to vector<16x32xf32>
    %7 = arith.addf %4, %6 : vector<16x32xf32>
    %c3 = arith.constant 3 : index
    %c0_6 = arith.constant 0 : index
    %c0_7 = arith.constant 0 : index
    %8 = vector.load %arg1[%c3, %c0_6, %c0_7] : memref<5x16x32xf32, #tpu.memory_space<vmem>>, vector<1x16x32xf32>
    %9 = vector.shape_cast %8 : vector<1x16x32xf32> to vector<16x32xf32>
    %10 = arith.addf %7, %9 : vector<16x32xf32>
    %c4 = arith.constant 4 : index
    %c0_8 = arith.constant 0 : index
    %c0_9 = arith.constant 0 : index
    %11 = vector.load %arg1[%c4, %c0_8, %c0_9] : memref<5x16x32xf32, #tpu.memory_space<vmem>>, vector<1x16x32xf32>
    %12 = vector.shape_cast %11 : vector<1x16x32xf32> to vector<16x32xf32>
    %13 = arith.addf %10, %12 : vector<16x32xf32>
    %c0_10 = arith.constant 0 : index
    %c0_11 = arith.constant 0 : index
    %14 = vector.load %arg2[%c0_10, %c0_11] : memref<1x32xf32, #tpu.memory_space<vmem>>, vector<1x32xf32>
    %c0_12 = arith.constant 0 : index
    %c0_13 = arith.constant 0 : index
    %15 = vector.load %arg3[%c0_12, %c0_13] : memref<1x32xf32, #tpu.memory_space<vmem>>, vector<1x32xf32>
    %cst = arith.constant dense<0.000000e+00> : vector<16xf32>
    %16 = vector.multi_reduction <add>, %13, %cst [1] : vector<16x32xf32> to vector<16xf32>
    %17 = vector.shape_cast %16 : vector<16xf32> to vector<16x1xf32>
    %cst_14 = arith.constant 3.200000e+01 : f32
    %18 = vector.broadcast %cst_14 : f32 to vector<16x1xf32>
    %19 = arith.divf %17, %18 : vector<16x1xf32>
    %20 = vector.broadcast %19 : vector<16x1xf32> to vector<16x32xf32>
    %21 = arith.subf %13, %20 : vector<16x32xf32>
    %22 = arith.mulf %21, %21 : vector<16x32xf32>
    %cst_15 = arith.constant dense<0.000000e+00> : vector<16xf32>
    %23 = vector.multi_reduction <add>, %22, %cst_15 [1] : vector<16x32xf32> to vector<16xf32>
    %24 = vector.shape_cast %23 : vector<16xf32> to vector<16x1xf32>
    %cst_16 = arith.constant 3.200000e+01 : f32
    %25 = vector.broadcast %cst_16 : f32 to vector<16x1xf32>
    %26 = arith.divf %24, %25 : vector<16x1xf32>
    %27 = vector.broadcast %19 : vector<16x1xf32> to vector<16x32xf32>
    %28 = arith.subf %13, %27 : vector<16x32xf32>
    %cst_17 = arith.constant 9.99999974E-6 : f32
    %29 = vector.broadcast %cst_17 : f32 to vector<16x1xf32>
    %30 = arith.addf %26, %29 : vector<16x1xf32>
    %31 = math.rsqrt %30 : vector<16x1xf32>
    %32 = vector.broadcast %31 : vector<16x1xf32> to vector<16x32xf32>
    %33 = arith.mulf %28, %32 : vector<16x32xf32>
    %34 = vector.broadcast %14 : vector<1x32xf32> to vector<16x32xf32>
    %35 = arith.mulf %33, %34 : vector<16x32xf32>
    %36 = vector.broadcast %15 : vector<1x32xf32> to vector<16x32xf32>
    %37 = arith.addf %35, %36 : vector<16x32xf32>
    %c0_18 = arith.constant 0 : index
    %c0_19 = arith.constant 0 : index
    %38 = vector.load %arg4[%c0_18, %c0_19] : memref<16x32xf32, #tpu.memory_space<vmem>>, vector<16x32xf32>
    tpu.vector_store %arg4[%c0_18, %c0_19], %37 {strides = array<i32>} : memref<16x32xf32, #tpu.memory_space<vmem>>, vector<16x32xf32>,
    return
  }
  func.func @transform_0(%arg0: i32) -> (i32, i32, i32) {
    %c0_i32 = arith.constant 0 : i32
    %c0_i32_0 = arith.constant 0 : i32
    %c0_i32_1 = arith.constant 0 : i32
    return %c0_i32, %arg0, %c0_i32_0 : i32, i32, i32
  }
  func.func @transform_1(%arg0: i32) -> (i32, i32) {
    %c0_i32 = arith.constant 0 : i32
    %c0_i32_0 = arith.constant 0 : i32
    %c0_i32_1 = arith.constant 0 : i32
    return %c0_i32, %c0_i32_0 : i32, i32
  }
  func.func @transform_2(%arg0: i32) -> (i32, i32) {
    %c0_i32 = arith.constant 0 : i32
    %c0_i32_0 = arith.constant 0 : i32
    %c0_i32_1 = arith.constant 0 : i32
    return %c0_i32, %c0_i32_0 : i32, i32
  }
  func.func @transform_3(%arg0: i32) -> (i32, i32) {
    %c0_i32 = arith.constant 0 : i32
    %c0_i32_0 = arith.constant 0 : i32
    return %arg0, %c0_i32 : i32, i32
  }
}

module attributes {stable_mosaic.version = 11 : i64} {
  func.func @_branch_kernel(%arg0: i32, %arg1: i32, %arg2: memref<16x32xf32, #tpu.memory_space<vmem>>, %arg3: memref<1x32x32xf32, #tpu.memory_space<vmem>>, %arg4: memref<1x1x32xf32, #tpu.memory_space<vmem>>, %arg5: memref<1x32x32xf32, #tpu.memory_space<vmem>>, %arg6: memref<1x1x32xf32, #tpu.memory_space<vmem>>, %arg7: memref<1x32xf32, #tpu.memory_space<vmem>>, %arg8: memref<1x32xf32, #tpu.memory_space<vmem>>, %arg9: memref<1x32xf32, #tpu.memory_space<vmem>>, %arg10: memref<1x32xf32, #tpu.memory_space<vmem>>, %arg11: memref<1x32xf32, #tpu.memory_space<vmem>>, %arg12: memref<1x32xf32, #tpu.memory_space<vmem>>, %arg13: memref<32x32xf32, #tpu.memory_space<vmem>>, %arg14: memref<1x32xf32, #tpu.memory_space<vmem>>, %arg15: memref<32x32xf32, #tpu.memory_space<vmem>>, %arg16: memref<1x32xf32, #tpu.memory_space<vmem>>, %arg17: memref<32x32xf32, #tpu.memory_space<vmem>>, %arg18: memref<1x32xf32, #tpu.memory_space<vmem>>, %arg19: memref<32x32xf32, #tpu.memory_space<vmem>>, %arg20: memref<1x32xf32, #tpu.memory_space<vmem>>, %arg21: memref<1x32xf32, #tpu.memory_space<vmem>>, %arg22: memref<1x32xf32, #tpu.memory_space<vmem>>, %arg23: memref<1x32xf32, #tpu.memory_space<vmem>>, %arg24: memref<1x32xf32, #tpu.memory_space<vmem>>, %arg25: memref<32x64xf32, #tpu.memory_space<vmem>>, %arg26: memref<1x64xf32, #tpu.memory_space<vmem>>, %arg27: memref<64x32xf32, #tpu.memory_space<vmem>>, %arg28: memref<1x32xf32, #tpu.memory_space<vmem>>, %arg29: memref<1x16x32xf32, #tpu.memory_space<vmem>>) attributes {dimension_semantics = [#tpu.dimension_semantics<parallel>, #tpu.dimension_semantics<parallel>], iteration_bounds = array<i64: 5, 1>, scalar_prefetch = 0 : i64, scratch_operands = 0 : i64, tpu.core_type = #tpu.core_type<tc>, window_params = [{transform_indices = @transform_0, window_bounds = array<i64: 16, 32>}, {transform_indices = @transform_1, window_bounds = array<i64: 1, 32, 32>}, {transform_indices = @transform_2, window_bounds = array<i64: 1, 1, 32>}, {transform_indices = @transform_3, window_bounds = array<i64: 1, 32, 32>}, {transform_indices = @transform_4, window_bounds = array<i64: 1, 1, 32>}, {pipeline_mode = #tpu.pipeline_mode<synchronous>, transform_indices = @transform_5, window_bounds = array<i64: 1, 32>}, {pipeline_mode = #tpu.pipeline_mode<synchronous>, transform_indices = @transform_6, window_bounds = array<i64: 1, 32>}, {pipeline_mode = #tpu.pipeline_mode<synchronous>, transform_indices = @transform_7, window_bounds = array<i64: 1, 32>}, {pipeline_mode = #tpu.pipeline_mode<synchronous>, transform_indices = @transform_8, window_bounds = array<i64: 1, 32>}, {pipeline_mode = #tpu.pipeline_mode<synchronous>, transform_indices = @transform_9, window_bounds = array<i64: 1, 32>}, {pipeline_mode = #tpu.pipeline_mode<synchronous>, transform_indices = @transform_10, window_bounds = array<i64: 1, 32>}, {pipeline_mode = #tpu.pipeline_mode<synchronous>, transform_indices = @transform_11, window_bounds = array<i64: 32, 32>}, {pipeline_mode = #tpu.pipeline_mode<synchronous>, transform_indices = @transform_12, window_bounds = array<i64: 1, 32>}, {pipeline_mode = #tpu.pipeline_mode<synchronous>, transform_indices = @transform_13, window_bounds = array<i64: 32, 32>}, {pipeline_mode = #tpu.pipeline_mode<synchronous>, transform_indices = @transform_14, window_bounds = array<i64: 1, 32>}, {pipeline_mode = #tpu.pipeline_mode<synchronous>, transform_indices = @transform_15, window_bounds = array<i64: 32, 32>}, {pipeline_mode = #tpu.pipeline_mode<synchronous>, transform_indices = @transform_16, window_bounds = array<i64: 1, 32>}, {pipeline_mode = #tpu.pipeline_mode<synchronous>, transform_indices = @transform_17, window_bounds = array<i64: 32, 32>}, {pipeline_mode = #tpu.pipeline_mode<synchronous>, transform_indices = @transform_18, window_bounds = array<i64: 1, 32>}, {pipeline_mode = #tpu.pipeline_mode<synchronous>, transform_indices = @transform_19, window_bounds = array<i64: 1, 32>}, {pipeline_mode = #tpu.pipeline_mode<synchronous>, transform_indices = @transform_20, window_bounds = array<i64: 1, 32>}, {pipeline_mode = #tpu.pipeline_mode<synchronous>, transform_indices = @transform_21, window_bounds = array<i64: 1, 32>}, {pipeline_mode = #tpu.pipeline_mode<synchronous>, transform_indices = @transform_22, window_bounds = array<i64: 1, 32>}, {pipeline_mode = #tpu.pipeline_mode<synchronous>, transform_indices = @transform_23, window_bounds = array<i64: 32, 64>}, {pipeline_mode = #tpu.pipeline_mode<synchronous>, transform_indices = @transform_24, window_bounds = array<i64: 1, 64>}, {pipeline_mode = #tpu.pipeline_mode<synchronous>, transform_indices = @transform_25, window_bounds = array<i64: 64, 32>}, {pipeline_mode = #tpu.pipeline_mode<synchronous>, transform_indices = @transform_26, window_bounds = array<i64: 1, 32>}, {transform_indices = @transform_27, window_bounds = array<i64: 1, 16, 32>}]} {
    %c0 = arith.constant 0 : index
    %c0_0 = arith.constant 0 : index
    %0 = vector.load %arg2[%c0, %c0_0] : memref<16x32xf32, #tpu.memory_space<vmem>>, vector<16x32xf32>
    %c0_1 = arith.constant 0 : index
    %c0_2 = arith.constant 0 : index
    %c0_3 = arith.constant 0 : index
    %1 = vector.load %arg3[%c0_1, %c0_2, %c0_3] : memref<1x32x32xf32, #tpu.memory_space<vmem>>, vector<1x32x32xf32>
    %2 = vector.shape_cast %1 : vector<1x32x32xf32> to vector<32x32xf32>
    %cst = arith.constant dense<0.000000e+00> : vector<16x32xf32>
    %3 = tpu.matmul %0, %2, %cst {dimension_numbers = #tpu.dot_dimension_numbers<[1], [0], [0], [1], [0, 0, 1, 1], [], []>} : vector<16x32xf32>, vector<32x32xf32>, vector<16x32xf32> -> vector<16x32xf32>
    %c0_4 = arith.constant 0 : index
    %c0_5 = arith.constant 0 : index
    %c0_6 = arith.constant 0 : index
    %4 = vector.load %arg4[%c0_4, %c0_5, %c0_6] : memref<1x1x32xf32, #tpu.memory_space<vmem>>, vector<1x1x32xf32>
    %5 = vector.shape_cast %4 : vector<1x1x32xf32> to vector<1x32xf32>
    %6 = vector.broadcast %5 : vector<1x32xf32> to vector<16x32xf32>
    %7 = arith.addf %3, %6 : vector<16x32xf32>
    %8 = arith.addf %7, %0 : vector<16x32xf32>
    %c0_7 = arith.constant 0 : index
    %c0_8 = arith.constant 0 : index
    %9 = vector.load %arg7[%c0_7, %c0_8] : memref<1x32xf32, #tpu.memory_space<vmem>>, vector<1x32xf32>
    %c0_9 = arith.constant 0 : index
    %c0_10 = arith.constant 0 : index
    %10 = vector.load %arg8[%c0_9, %c0_10] : memref<1x32xf32, #tpu.memory_space<vmem>>, vector<1x32xf32>
    %cst_11 = arith.constant dense<0.000000e+00> : vector<16xf32>
    %11 = vector.multi_reduction <add>, %8, %cst_11 [1] : vector<16x32xf32> to vector<16xf32>
    %12 = vector.shape_cast %11 : vector<16xf32> to vector<16x1xf32>
    %cst_12 = arith.constant 3.200000e+01 : f32
    %13 = vector.broadcast %cst_12 : f32 to vector<16x1xf32>
    %14 = arith.divf %12, %13 : vector<16x1xf32>
    %15 = vector.broadcast %14 : vector<16x1xf32> to vector<16x32xf32>
    %16 = arith.subf %8, %15 : vector<16x32xf32>
    %17 = arith.mulf %16, %16 : vector<16x32xf32>
    %cst_13 = arith.constant dense<0.000000e+00> : vector<16xf32>
    %18 = vector.multi_reduction <add>, %17, %cst_13 [1] : vector<16x32xf32> to vector<16xf32>
    %19 = vector.shape_cast %18 : vector<16xf32> to vector<16x1xf32>
    %cst_14 = arith.constant 3.200000e+01 : f32
    %20 = vector.broadcast %cst_14 : f32 to vector<16x1xf32>
    %21 = arith.divf %19, %20 : vector<16x1xf32>
    %22 = vector.broadcast %14 : vector<16x1xf32> to vector<16x32xf32>
    %23 = arith.subf %8, %22 : vector<16x32xf32>
    %cst_15 = arith.constant 9.99999974E-6 : f32
    %24 = vector.broadcast %cst_15 : f32 to vector<16x1xf32>
    %25 = arith.addf %21, %24 : vector<16x1xf32>
    %26 = math.rsqrt %25 : vector<16x1xf32>
    %27 = vector.broadcast %26 : vector<16x1xf32> to vector<16x32xf32>
    %28 = arith.mulf %23, %27 : vector<16x32xf32>
    %29 = vector.broadcast %9 : vector<1x32xf32> to vector<16x32xf32>
    %30 = arith.mulf %28, %29 : vector<16x32xf32>
    %31 = vector.broadcast %10 : vector<1x32xf32> to vector<16x32xf32>
    %32 = arith.addf %30, %31 : vector<16x32xf32>
    %c0_16 = arith.constant 0 : index
    %c0_17 = arith.constant 0 : index
    %33 = vector.load %arg13[%c0_16, %c0_17] : memref<32x32xf32, #tpu.memory_space<vmem>>, vector<32x32xf32>
    %cst_18 = arith.constant dense<0.000000e+00> : vector<16x32xf32>
    %34 = tpu.matmul %32, %33, %cst_18 {dimension_numbers = #tpu.dot_dimension_numbers<[1], [0], [0], [1], [0, 0, 1, 1], [], []>} : vector<16x32xf32>, vector<32x32xf32>, vector<16x32xf32> -> vector<16x32xf32>
    %c0_19 = arith.constant 0 : index
    %c0_20 = arith.constant 0 : index
    %35 = vector.load %arg14[%c0_19, %c0_20] : memref<1x32xf32, #tpu.memory_space<vmem>>, vector<1x32xf32>
    %36 = vector.broadcast %35 : vector<1x32xf32> to vector<16x32xf32>
    %37 = arith.addf %34, %36 : vector<16x32xf32>
    %c0_21 = arith.constant 0 : index
    %c0_22 = arith.constant 0 : index
    %38 = vector.load %arg15[%c0_21, %c0_22] : memref<32x32xf32, #tpu.memory_space<vmem>>, vector<32x32xf32>
    %cst_23 = arith.constant dense<0.000000e+00> : vector<16x32xf32>
    %39 = tpu.matmul %32, %38, %cst_23 {dimension_numbers = #tpu.dot_dimension_numbers<[1], [0], [0], [1], [0, 0, 1, 1], [], []>} : vector<16x32xf32>, vector<32x32xf32>, vector<16x32xf32> -> vector<16x32xf32>
    %c0_24 = arith.constant 0 : index
    %c0_25 = arith.constant 0 : index
    %40 = vector.load %arg16[%c0_24, %c0_25] : memref<1x32xf32, #tpu.memory_space<vmem>>, vector<1x32xf32>
    %41 = vector.broadcast %40 : vector<1x32xf32> to vector<16x32xf32>
    %42 = arith.addf %39, %41 : vector<16x32xf32>
    %c0_26 = arith.constant 0 : index
    %c0_27 = arith.constant 0 : index
    %43 = vector.load %arg17[%c0_26, %c0_27] : memref<32x32xf32, #tpu.memory_space<vmem>>, vector<32x32xf32>
    %cst_28 = arith.constant dense<0.000000e+00> : vector<16x32xf32>
    %44 = tpu.matmul %32, %43, %cst_28 {dimension_numbers = #tpu.dot_dimension_numbers<[1], [0], [0], [1], [0, 0, 1, 1], [], []>} : vector<16x32xf32>, vector<32x32xf32>, vector<16x32xf32> -> vector<16x32xf32>
    %c0_29 = arith.constant 0 : index
    %c0_30 = arith.constant 0 : index
    %45 = vector.load %arg18[%c0_29, %c0_30] : memref<1x32xf32, #tpu.memory_space<vmem>>, vector<1x32xf32>
    %46 = vector.broadcast %45 : vector<1x32xf32> to vector<16x32xf32>
    %47 = arith.addf %44, %46 : vector<16x32xf32>
    %48 = vector.extract_strided_slice %37 {offsets = [0, 0], sizes = [8, 32], strides = [1, 1]} : vector<16x32xf32> to vector<8x32xf32>
    %49 = vector.extract_strided_slice %42 {offsets = [0, 0], sizes = [8, 32], strides = [1, 1]} : vector<16x32xf32> to vector<8x32xf32>
    %50 = vector.extract_strided_slice %47 {offsets = [0, 0], sizes = [8, 32], strides = [1, 1]} : vector<16x32xf32> to vector<8x32xf32>
    %51 = vector.extract_strided_slice %48 {offsets = [0, 0], sizes = [8, 8], strides = [1, 1]} : vector<8x32xf32> to vector<8x8xf32>
    %cst_31 = arith.constant 0.353553385 : f32
    %52 = vector.broadcast %cst_31 : f32 to vector<8x8xf32>
    %53 = arith.mulf %51, %52 : vector<8x8xf32>
    %54 = vector.extract_strided_slice %49 {offsets = [0, 0], sizes = [8, 8], strides = [1, 1]} : vector<8x32xf32> to vector<8x8xf32>
    %55 = vector.extract_strided_slice %50 {offsets = [0, 0], sizes = [8, 8], strides = [1, 1]} : vector<8x32xf32> to vector<8x8xf32>
    %cst_32 = arith.constant dense<0.000000e+00> : vector<8x8xf32>
    %56 = tpu.matmul %53, %54, %cst_32 {dimension_numbers = #tpu.dot_dimension_numbers<[1], [1], [0], [0], [0, 0, 1, 0], [], []>} : vector<8x8xf32>, vector<8x8xf32>, vector<8x8xf32> -> vector<8x8xf32>
    %cst_33 = arith.constant dense<0xFF800000> : vector<8xf32>
    %57 = vector.multi_reduction <maximumf>, %56, %cst_33 [1] : vector<8x8xf32> to vector<8xf32>
    %58 = vector.shape_cast %57 : vector<8xf32> to vector<8x1xf32>
    %59 = vector.broadcast %58 : vector<8x1xf32> to vector<8x8xf32>
    %60 = arith.subf %56, %59 : vector<8x8xf32>
    %61 = math.exp %60 : vector<8x8xf32>
    %cst_34 = arith.constant dense<0.000000e+00> : vector<8xf32>
    %62 = vector.multi_reduction <add>, %61, %cst_34 [1] : vector<8x8xf32> to vector<8xf32>
    %63 = vector.shape_cast %62 : vector<8xf32> to vector<8x1xf32>
    %64 = tpu.reciprocal %63 : vector<8x1xf32> -> vector<8x1xf32>
    %65 = vector.broadcast %64 : vector<8x1xf32> to vector<8x8xf32>
    %66 = arith.mulf %61, %65 : vector<8x8xf32>
    %cst_35 = arith.constant dense<0.000000e+00> : vector<8x8xf32>
    %67 = tpu.matmul %66, %55, %cst_35 {dimension_numbers = #tpu.dot_dimension_numbers<[1], [0], [0], [1], [0, 0, 1, 1], [], []>} : vector<8x8xf32>, vector<8x8xf32>, vector<8x8xf32> -> vector<8x8xf32>
    %68 = vector.extract_strided_slice %48 {offsets = [0, 8], sizes = [8, 8], strides = [1, 1]} : vector<8x32xf32> to vector<8x8xf32>
    %cst_36 = arith.constant 0.353553385 : f32
    %69 = vector.broadcast %cst_36 : f32 to vector<8x8xf32>
    %70 = arith.mulf %68, %69 : vector<8x8xf32>
    %71 = vector.extract_strided_slice %49 {offsets = [0, 8], sizes = [8, 8], strides = [1, 1]} : vector<8x32xf32> to vector<8x8xf32>
    %72 = vector.extract_strided_slice %50 {offsets = [0, 8], sizes = [8, 8], strides = [1, 1]} : vector<8x32xf32> to vector<8x8xf32>
    %cst_37 = arith.constant dense<0.000000e+00> : vector<8x8xf32>
    %73 = tpu.matmul %70, %71, %cst_37 {dimension_numbers = #tpu.dot_dimension_numbers<[1], [1], [0], [0], [0, 0, 1, 0], [], []>} : vector<8x8xf32>, vector<8x8xf32>, vector<8x8xf32> -> vector<8x8xf32>
    %cst_38 = arith.constant dense<0xFF800000> : vector<8xf32>
    %74 = vector.multi_reduction <maximumf>, %73, %cst_38 [1] : vector<8x8xf32> to vector<8xf32>
    %75 = vector.shape_cast %74 : vector<8xf32> to vector<8x1xf32>
    %76 = vector.broadcast %75 : vector<8x1xf32> to vector<8x8xf32>
    %77 = arith.subf %73, %76 : vector<8x8xf32>
    %78 = math.exp %77 : vector<8x8xf32>
    %cst_39 = arith.constant dense<0.000000e+00> : vector<8xf32>
    %79 = vector.multi_reduction <add>, %78, %cst_39 [1] : vector<8x8xf32> to vector<8xf32>
    %80 = vector.shape_cast %79 : vector<8xf32> to vector<8x1xf32>
    %81 = tpu.reciprocal %80 : vector<8x1xf32> -> vector<8x1xf32>
    %82 = vector.broadcast %81 : vector<8x1xf32> to vector<8x8xf32>
    %83 = arith.mulf %78, %82 : vector<8x8xf32>
    %cst_40 = arith.constant dense<0.000000e+00> : vector<8x8xf32>
    %84 = tpu.matmul %83, %72, %cst_40 {dimension_numbers = #tpu.dot_dimension_numbers<[1], [0], [0], [1], [0, 0, 1, 1], [], []>} : vector<8x8xf32>, vector<8x8xf32>, vector<8x8xf32> -> vector<8x8xf32>
    %85 = vector.extract_strided_slice %48 {offsets = [0, 16], sizes = [8, 8], strides = [1, 1]} : vector<8x32xf32> to vector<8x8xf32>
    %cst_41 = arith.constant 0.353553385 : f32
    %86 = vector.broadcast %cst_41 : f32 to vector<8x8xf32>
    %87 = arith.mulf %85, %86 : vector<8x8xf32>
    %88 = vector.extract_strided_slice %49 {offsets = [0, 16], sizes = [8, 8], strides = [1, 1]} : vector<8x32xf32> to vector<8x8xf32>
    %89 = vector.extract_strided_slice %50 {offsets = [0, 16], sizes = [8, 8], strides = [1, 1]} : vector<8x32xf32> to vector<8x8xf32>
    %cst_42 = arith.constant dense<0.000000e+00> : vector<8x8xf32>
    %90 = tpu.matmul %87, %88, %cst_42 {dimension_numbers = #tpu.dot_dimension_numbers<[1], [1], [0], [0], [0, 0, 1, 0], [], []>} : vector<8x8xf32>, vector<8x8xf32>, vector<8x8xf32> -> vector<8x8xf32>
    %cst_43 = arith.constant dense<0xFF800000> : vector<8xf32>
    %91 = vector.multi_reduction <maximumf>, %90, %cst_43 [1] : vector<8x8xf32> to vector<8xf32>
    %92 = vector.shape_cast %91 : vector<8xf32> to vector<8x1xf32>
    %93 = vector.broadcast %92 : vector<8x1xf32> to vector<8x8xf32>
    %94 = arith.subf %90, %93 : vector<8x8xf32>
    %95 = math.exp %94 : vector<8x8xf32>
    %cst_44 = arith.constant dense<0.000000e+00> : vector<8xf32>
    %96 = vector.multi_reduction <add>, %95, %cst_44 [1] : vector<8x8xf32> to vector<8xf32>
    %97 = vector.shape_cast %96 : vector<8xf32> to vector<8x1xf32>
    %98 = tpu.reciprocal %97 : vector<8x1xf32> -> vector<8x1xf32>
    %99 = vector.broadcast %98 : vector<8x1xf32> to vector<8x8xf32>
    %100 = arith.mulf %95, %99 : vector<8x8xf32>
    %cst_45 = arith.constant dense<0.000000e+00> : vector<8x8xf32>
    %101 = tpu.matmul %100, %89, %cst_45 {dimension_numbers = #tpu.dot_dimension_numbers<[1], [0], [0], [1], [0, 0, 1, 1], [], []>} : vector<8x8xf32>, vector<8x8xf32>, vector<8x8xf32> -> vector<8x8xf32>
    %102 = vector.extract_strided_slice %48 {offsets = [0, 24], sizes = [8, 8], strides = [1, 1]} : vector<8x32xf32> to vector<8x8xf32>
    %cst_46 = arith.constant 0.353553385 : f32
    %103 = vector.broadcast %cst_46 : f32 to vector<8x8xf32>
    %104 = arith.mulf %102, %103 : vector<8x8xf32>
    %105 = vector.extract_strided_slice %49 {offsets = [0, 24], sizes = [8, 8], strides = [1, 1]} : vector<8x32xf32> to vector<8x8xf32>
    %106 = vector.extract_strided_slice %50 {offsets = [0, 24], sizes = [8, 8], strides = [1, 1]} : vector<8x32xf32> to vector<8x8xf32>
    %cst_47 = arith.constant dense<0.000000e+00> : vector<8x8xf32>
    %107 = tpu.matmul %104, %105, %cst_47 {dimension_numbers = #tpu.dot_dimension_numbers<[1], [1], [0], [0], [0, 0, 1, 0], [], []>} : vector<8x8xf32>, vector<8x8xf32>, vector<8x8xf32> -> vector<8x8xf32>
    %cst_48 = arith.constant dense<0xFF800000> : vector<8xf32>
    %108 = vector.multi_reduction <maximumf>, %107, %cst_48 [1] : vector<8x8xf32> to vector<8xf32>
    %109 = vector.shape_cast %108 : vector<8xf32> to vector<8x1xf32>
    %110 = vector.broadcast %109 : vector<8x1xf32> to vector<8x8xf32>
    %111 = arith.subf %107, %110 : vector<8x8xf32>
    %112 = math.exp %111 : vector<8x8xf32>
    %cst_49 = arith.constant dense<0.000000e+00> : vector<8xf32>
    %113 = vector.multi_reduction <add>, %112, %cst_49 [1] : vector<8x8xf32> to vector<8xf32>
    %114 = vector.shape_cast %113 : vector<8xf32> to vector<8x1xf32>
    %115 = tpu.reciprocal %114 : vector<8x1xf32> -> vector<8x1xf32>
    %116 = vector.broadcast %115 : vector<8x1xf32> to vector<8x8xf32>
    %117 = arith.mulf %112, %116 : vector<8x8xf32>
    %cst_50 = arith.constant dense<0.000000e+00> : vector<8x8xf32>
    %118 = tpu.matmul %117, %106, %cst_50 {dimension_numbers = #tpu.dot_dimension_numbers<[1], [0], [0], [1], [0, 0, 1, 1], [], []>} : vector<8x8xf32>, vector<8x8xf32>, vector<8x8xf32> -> vector<8x8xf32>
    %119 = tpu.concatenate %67, %84, %101, %118 in 1 : vector<8x8xf32>, vector<8x8xf32>, vector<8x8xf32>, vector<8x8xf32> -> vector<8x32xf32>
    %120 = vector.extract_strided_slice %37 {offsets = [8, 0], sizes = [8, 32], strides = [1, 1]} : vector<16x32xf32> to vector<8x32xf32>
    %121 = vector.extract_strided_slice %42 {offsets = [8, 0], sizes = [8, 32], strides = [1, 1]} : vector<16x32xf32> to vector<8x32xf32>
    %122 = vector.extract_strided_slice %47 {offsets = [8, 0], sizes = [8, 32], strides = [1, 1]} : vector<16x32xf32> to vector<8x32xf32>
    %123 = vector.extract_strided_slice %120 {offsets = [0, 0], sizes = [8, 8], strides = [1, 1]} : vector<8x32xf32> to vector<8x8xf32>
    %cst_51 = arith.constant 0.353553385 : f32
    %124 = vector.broadcast %cst_51 : f32 to vector<8x8xf32>
    %125 = arith.mulf %123, %124 : vector<8x8xf32>
    %126 = vector.extract_strided_slice %121 {offsets = [0, 0], sizes = [8, 8], strides = [1, 1]} : vector<8x32xf32> to vector<8x8xf32>
    %127 = vector.extract_strided_slice %122 {offsets = [0, 0], sizes = [8, 8], strides = [1, 1]} : vector<8x32xf32> to vector<8x8xf32>
    %cst_52 = arith.constant dense<0.000000e+00> : vector<8x8xf32>
    %128 = tpu.matmul %125, %126, %cst_52 {dimension_numbers = #tpu.dot_dimension_numbers<[1], [1], [0], [0], [0, 0, 1, 0], [], []>} : vector<8x8xf32>, vector<8x8xf32>, vector<8x8xf32> -> vector<8x8xf32>
    %cst_53 = arith.constant dense<0xFF800000> : vector<8xf32>
    %129 = vector.multi_reduction <maximumf>, %128, %cst_53 [1] : vector<8x8xf32> to vector<8xf32>
    %130 = vector.shape_cast %129 : vector<8xf32> to vector<8x1xf32>
    %131 = vector.broadcast %130 : vector<8x1xf32> to vector<8x8xf32>
    %132 = arith.subf %128, %131 : vector<8x8xf32>
    %133 = math.exp %132 : vector<8x8xf32>
    %cst_54 = arith.constant dense<0.000000e+00> : vector<8xf32>
    %134 = vector.multi_reduction <add>, %133, %cst_54 [1] : vector<8x8xf32> to vector<8xf32>
    %135 = vector.shape_cast %134 : vector<8xf32> to vector<8x1xf32>
    %136 = tpu.reciprocal %135 : vector<8x1xf32> -> vector<8x1xf32>
    %137 = vector.broadcast %136 : vector<8x1xf32> to vector<8x8xf32>
    %138 = arith.mulf %133, %137 : vector<8x8xf32>
    %cst_55 = arith.constant dense<0.000000e+00> : vector<8x8xf32>
    %139 = tpu.matmul %138, %127, %cst_55 {dimension_numbers = #tpu.dot_dimension_numbers<[1], [0], [0], [1], [0, 0, 1, 1], [], []>} : vector<8x8xf32>, vector<8x8xf32>, vector<8x8xf32> -> vector<8x8xf32>
    %140 = vector.extract_strided_slice %120 {offsets = [0, 8], sizes = [8, 8], strides = [1, 1]} : vector<8x32xf32> to vector<8x8xf32>
    %cst_56 = arith.constant 0.353553385 : f32
    %141 = vector.broadcast %cst_56 : f32 to vector<8x8xf32>
    %142 = arith.mulf %140, %141 : vector<8x8xf32>
    %143 = vector.extract_strided_slice %121 {offsets = [0, 8], sizes = [8, 8], strides = [1, 1]} : vector<8x32xf32> to vector<8x8xf32>
    %144 = vector.extract_strided_slice %122 {offsets = [0, 8], sizes = [8, 8], strides = [1, 1]} : vector<8x32xf32> to vector<8x8xf32>
    %cst_57 = arith.constant dense<0.000000e+00> : vector<8x8xf32>
    %145 = tpu.matmul %142, %143, %cst_57 {dimension_numbers = #tpu.dot_dimension_numbers<[1], [1], [0], [0], [0, 0, 1, 0], [], []>} : vector<8x8xf32>, vector<8x8xf32>, vector<8x8xf32> -> vector<8x8xf32>
    %cst_58 = arith.constant dense<0xFF800000> : vector<8xf32>
    %146 = vector.multi_reduction <maximumf>, %145, %cst_58 [1] : vector<8x8xf32> to vector<8xf32>
    %147 = vector.shape_cast %146 : vector<8xf32> to vector<8x1xf32>
    %148 = vector.broadcast %147 : vector<8x1xf32> to vector<8x8xf32>
    %149 = arith.subf %145, %148 : vector<8x8xf32>
    %150 = math.exp %149 : vector<8x8xf32>
    %cst_59 = arith.constant dense<0.000000e+00> : vector<8xf32>
    %151 = vector.multi_reduction <add>, %150, %cst_59 [1] : vector<8x8xf32> to vector<8xf32>
    %152 = vector.shape_cast %151 : vector<8xf32> to vector<8x1xf32>
    %153 = tpu.reciprocal %152 : vector<8x1xf32> -> vector<8x1xf32>
    %154 = vector.broadcast %153 : vector<8x1xf32> to vector<8x8xf32>
    %155 = arith.mulf %150, %154 : vector<8x8xf32>
    %cst_60 = arith.constant dense<0.000000e+00> : vector<8x8xf32>
    %156 = tpu.matmul %155, %144, %cst_60 {dimension_numbers = #tpu.dot_dimension_numbers<[1], [0], [0], [1], [0, 0, 1, 1], [], []>} : vector<8x8xf32>, vector<8x8xf32>, vector<8x8xf32> -> vector<8x8xf32>
    %157 = vector.extract_strided_slice %120 {offsets = [0, 16], sizes = [8, 8], strides = [1, 1]} : vector<8x32xf32> to vector<8x8xf32>
    %cst_61 = arith.constant 0.353553385 : f32
    %158 = vector.broadcast %cst_61 : f32 to vector<8x8xf32>
    %159 = arith.mulf %157, %158 : vector<8x8xf32>
    %160 = vector.extract_strided_slice %121 {offsets = [0, 16], sizes = [8, 8], strides = [1, 1]} : vector<8x32xf32> to vector<8x8xf32>
    %161 = vector.extract_strided_slice %122 {offsets = [0, 16], sizes = [8, 8], strides = [1, 1]} : vector<8x32xf32> to vector<8x8xf32>
    %cst_62 = arith.constant dense<0.000000e+00> : vector<8x8xf32>
    %162 = tpu.matmul %159, %160, %cst_62 {dimension_numbers = #tpu.dot_dimension_numbers<[1], [1], [0], [0], [0, 0, 1, 0], [], []>} : vector<8x8xf32>, vector<8x8xf32>, vector<8x8xf32> -> vector<8x8xf32>
    %cst_63 = arith.constant dense<0xFF800000> : vector<8xf32>
    %163 = vector.multi_reduction <maximumf>, %162, %cst_63 [1] : vector<8x8xf32> to vector<8xf32>
    %164 = vector.shape_cast %163 : vector<8xf32> to vector<8x1xf32>
    %165 = vector.broadcast %164 : vector<8x1xf32> to vector<8x8xf32>
    %166 = arith.subf %162, %165 : vector<8x8xf32>
    %167 = math.exp %166 : vector<8x8xf32>
    %cst_64 = arith.constant dense<0.000000e+00> : vector<8xf32>
    %168 = vector.multi_reduction <add>, %167, %cst_64 [1] : vector<8x8xf32> to vector<8xf32>
    %169 = vector.shape_cast %168 : vector<8xf32> to vector<8x1xf32>
    %170 = tpu.reciprocal %169 : vector<8x1xf32> -> vector<8x1xf32>
    %171 = vector.broadcast %170 : vector<8x1xf32> to vector<8x8xf32>
    %172 = arith.mulf %167, %171 : vector<8x8xf32>
    %cst_65 = arith.constant dense<0.000000e+00> : vector<8x8xf32>
    %173 = tpu.matmul %172, %161, %cst_65 {dimension_numbers = #tpu.dot_dimension_numbers<[1], [0], [0], [1], [0, 0, 1, 1], [], []>} : vector<8x8xf32>, vector<8x8xf32>, vector<8x8xf32> -> vector<8x8xf32>
    %174 = vector.extract_strided_slice %120 {offsets = [0, 24], sizes = [8, 8], strides = [1, 1]} : vector<8x32xf32> to vector<8x8xf32>
    %cst_66 = arith.constant 0.353553385 : f32
    %175 = vector.broadcast %cst_66 : f32 to vector<8x8xf32>
    %176 = arith.mulf %174, %175 : vector<8x8xf32>
    %177 = vector.extract_strided_slice %121 {offsets = [0, 24], sizes = [8, 8], strides = [1, 1]} : vector<8x32xf32> to vector<8x8xf32>
    %178 = vector.extract_strided_slice %122 {offsets = [0, 24], sizes = [8, 8], strides = [1, 1]} : vector<8x32xf32> to vector<8x8xf32>
    %cst_67 = arith.constant dense<0.000000e+00> : vector<8x8xf32>
    %179 = tpu.matmul %176, %177, %cst_67 {dimension_numbers = #tpu.dot_dimension_numbers<[1], [1], [0], [0], [0, 0, 1, 0], [], []>} : vector<8x8xf32>, vector<8x8xf32>, vector<8x8xf32> -> vector<8x8xf32>
    %cst_68 = arith.constant dense<0xFF800000> : vector<8xf32>
    %180 = vector.multi_reduction <maximumf>, %179, %cst_68 [1] : vector<8x8xf32> to vector<8xf32>
    %181 = vector.shape_cast %180 : vector<8xf32> to vector<8x1xf32>
    %182 = vector.broadcast %181 : vector<8x1xf32> to vector<8x8xf32>
    %183 = arith.subf %179, %182 : vector<8x8xf32>
    %184 = math.exp %183 : vector<8x8xf32>
    %cst_69 = arith.constant dense<0.000000e+00> : vector<8xf32>
    %185 = vector.multi_reduction <add>, %184, %cst_69 [1] : vector<8x8xf32> to vector<8xf32>
    %186 = vector.shape_cast %185 : vector<8xf32> to vector<8x1xf32>
    %187 = tpu.reciprocal %186 : vector<8x1xf32> -> vector<8x1xf32>
    %188 = vector.broadcast %187 : vector<8x1xf32> to vector<8x8xf32>
    %189 = arith.mulf %184, %188 : vector<8x8xf32>
    %cst_70 = arith.constant dense<0.000000e+00> : vector<8x8xf32>
    %190 = tpu.matmul %189, %178, %cst_70 {dimension_numbers = #tpu.dot_dimension_numbers<[1], [0], [0], [1], [0, 0, 1, 1], [], []>} : vector<8x8xf32>, vector<8x8xf32>, vector<8x8xf32> -> vector<8x8xf32>
    %191 = tpu.concatenate %139, %156, %173, %190 in 1 : vector<8x8xf32>, vector<8x8xf32>, vector<8x8xf32>, vector<8x8xf32> -> vector<8x32xf32>
    %192 = tpu.concatenate %119, %191 in 0 : vector<8x32xf32>, vector<8x32xf32> -> vector<16x32xf32>
    %c0_71 = arith.constant 0 : index
    %c0_72 = arith.constant 0 : index
    %193 = vector.load %arg19[%c0_71, %c0_72] : memref<32x32xf32, #tpu.memory_space<vmem>>, vector<32x32xf32>
    %cst_73 = arith.constant dense<0.000000e+00> : vector<16x32xf32>
    %194 = tpu.matmul %192, %193, %cst_73 {dimension_numbers = #tpu.dot_dimension_numbers<[1], [0], [0], [1], [0, 0, 1, 1], [], []>} : vector<16x32xf32>, vector<32x32xf32>, vector<16x32xf32> -> vector<16x32xf32>
    %c0_74 = arith.constant 0 : index
    %c0_75 = arith.constant 0 : index
    %195 = vector.load %arg20[%c0_74, %c0_75] : memref<1x32xf32, #tpu.memory_space<vmem>>, vector<1x32xf32>
    %196 = vector.broadcast %195 : vector<1x32xf32> to vector<16x32xf32>
    %197 = arith.addf %194, %196 : vector<16x32xf32>
    %198 = arith.addf %32, %197 : vector<16x32xf32>
    %c0_76 = arith.constant 0 : index
    %c0_77 = arith.constant 0 : index
    %199 = vector.load %arg21[%c0_76, %c0_77] : memref<1x32xf32, #tpu.memory_space<vmem>>, vector<1x32xf32>
    %c0_78 = arith.constant 0 : index
    %c0_79 = arith.constant 0 : index
    %200 = vector.load %arg22[%c0_78, %c0_79] : memref<1x32xf32, #tpu.memory_space<vmem>>, vector<1x32xf32>
    %cst_80 = arith.constant dense<0.000000e+00> : vector<16xf32>
    %201 = vector.multi_reduction <add>, %198, %cst_80 [1] : vector<16x32xf32> to vector<16xf32>
    %202 = vector.shape_cast %201 : vector<16xf32> to vector<16x1xf32>
    %cst_81 = arith.constant 3.200000e+01 : f32
    %203 = vector.broadcast %cst_81 : f32 to vector<16x1xf32>
    %204 = arith.divf %202, %203 : vector<16x1xf32>
    %205 = vector.broadcast %204 : vector<16x1xf32> to vector<16x32xf32>
    %206 = arith.subf %198, %205 : vector<16x32xf32>
    %207 = arith.mulf %206, %206 : vector<16x32xf32>
    %cst_82 = arith.constant dense<0.000000e+00> : vector<16xf32>
    %208 = vector.multi_reduction <add>, %207, %cst_82 [1] : vector<16x32xf32> to vector<16xf32>
    %209 = vector.shape_cast %208 : vector<16xf32> to vector<16x1xf32>
    %cst_83 = arith.constant 3.200000e+01 : f32
    %210 = vector.broadcast %cst_83 : f32 to vector<16x1xf32>
    %211 = arith.divf %209, %210 : vector<16x1xf32>
    %212 = vector.broadcast %204 : vector<16x1xf32> to vector<16x32xf32>
    %213 = arith.subf %198, %212 : vector<16x32xf32>
    %cst_84 = arith.constant 9.99999974E-6 : f32
    %214 = vector.broadcast %cst_84 : f32 to vector<16x1xf32>
    %215 = arith.addf %211, %214 : vector<16x1xf32>
    %216 = math.rsqrt %215 : vector<16x1xf32>
    %217 = vector.broadcast %216 : vector<16x1xf32> to vector<16x32xf32>
    %218 = arith.mulf %213, %217 : vector<16x32xf32>
    %219 = vector.broadcast %199 : vector<1x32xf32> to vector<16x32xf32>
    %220 = arith.mulf %218, %219 : vector<16x32xf32>
    %221 = vector.broadcast %200 : vector<1x32xf32> to vector<16x32xf32>
    %222 = arith.addf %220, %221 : vector<16x32xf32>
    %c0_85 = arith.constant 0 : index
    %c0_86 = arith.constant 0 : index
    %223 = vector.load %arg25[%c0_85, %c0_86] : memref<32x64xf32, #tpu.memory_space<vmem>>, vector<32x64xf32>
    %cst_87 = arith.constant dense<0.000000e+00> : vector<16x64xf32>
    %224 = tpu.matmul %222, %223, %cst_87 {dimension_numbers = #tpu.dot_dimension_numbers<[1], [0], [0], [1], [0, 0, 1, 1], [], []>} : vector<16x32xf32>, vector<32x64xf32>, vector<16x64xf32> -> vector<16x64xf32>
    %c0_88 = arith.constant 0 : index
    %c0_89 = arith.constant 0 : index
    %225 = vector.load %arg26[%c0_88, %c0_89] : memref<1x64xf32, #tpu.memory_space<vmem>>, vector<1x64xf32>
    %226 = vector.broadcast %225 : vector<1x64xf32> to vector<16x64xf32>
    %227 = arith.addf %224, %226 : vector<16x64xf32>
    %cst_90 = arith.constant 0.000000e+00 : f32
    %228 = vector.broadcast %cst_90 : f32 to vector<16x64xf32>
    %229 = arith.maximumf %227, %228 : vector<16x64xf32>
    %c0_91 = arith.constant 0 : index
    %c0_92 = arith.constant 0 : index
    %230 = vector.load %arg27[%c0_91, %c0_92] : memref<64x32xf32, #tpu.memory_space<vmem>>, vector<64x32xf32>
    %cst_93 = arith.constant dense<0.000000e+00> : vector<16x32xf32>
    %231 = tpu.matmul %229, %230, %cst_93 {dimension_numbers = #tpu.dot_dimension_numbers<[1], [0], [0], [1], [0, 0, 1, 1], [], []>} : vector<16x64xf32>, vector<64x32xf32>, vector<16x32xf32> -> vector<16x32xf32>
    %c0_94 = arith.constant 0 : index
    %c0_95 = arith.constant 0 : index
    %232 = vector.load %arg28[%c0_94, %c0_95] : memref<1x32xf32, #tpu.memory_space<vmem>>, vector<1x32xf32>
    %233 = vector.broadcast %232 : vector<1x32xf32> to vector<16x32xf32>
    %234 = arith.addf %231, %233 : vector<16x32xf32>
    %235 = arith.addf %222, %234 : vector<16x32xf32>
    %c0_96 = arith.constant 0 : index
    %c0_97 = arith.constant 0 : index
    %236 = vector.load %arg23[%c0_96, %c0_97] : memref<1x32xf32, #tpu.memory_space<vmem>>, vector<1x32xf32>
    %c0_98 = arith.constant 0 : index
    %c0_99 = arith.constant 0 : index
    %237 = vector.load %arg24[%c0_98, %c0_99] : memref<1x32xf32, #tpu.memory_space<vmem>>, vector<1x32xf32>
    %cst_100 = arith.constant dense<0.000000e+00> : vector<16xf32>
    %238 = vector.multi_reduction <add>, %235, %cst_100 [1] : vector<16x32xf32> to vector<16xf32>
    %239 = vector.shape_cast %238 : vector<16xf32> to vector<16x1xf32>
    %cst_101 = arith.constant 3.200000e+01 : f32
    %240 = vector.broadcast %cst_101 : f32 to vector<16x1xf32>
    %241 = arith.divf %239, %240 : vector<16x1xf32>
    %242 = vector.broadcast %241 : vector<16x1xf32> to vector<16x32xf32>
    %243 = arith.subf %235, %242 : vector<16x32xf32>
    %244 = arith.mulf %243, %243 : vector<16x32xf32>
    %cst_102 = arith.constant dense<0.000000e+00> : vector<16xf32>
    %245 = vector.multi_reduction <add>, %244, %cst_102 [1] : vector<16x32xf32> to vector<16xf32>
    %246 = vector.shape_cast %245 : vector<16xf32> to vector<16x1xf32>
    %cst_103 = arith.constant 3.200000e+01 : f32
    %247 = vector.broadcast %cst_103 : f32 to vector<16x1xf32>
    %248 = arith.divf %246, %247 : vector<16x1xf32>
    %249 = vector.broadcast %241 : vector<16x1xf32> to vector<16x32xf32>
    %250 = arith.subf %235, %249 : vector<16x32xf32>
    %cst_104 = arith.constant 9.99999974E-6 : f32
    %251 = vector.broadcast %cst_104 : f32 to vector<16x1xf32>
    %252 = arith.addf %248, %251 : vector<16x1xf32>
    %253 = math.rsqrt %252 : vector<16x1xf32>
    %254 = vector.broadcast %253 : vector<16x1xf32> to vector<16x32xf32>
    %255 = arith.mulf %250, %254 : vector<16x32xf32>
    %256 = vector.broadcast %236 : vector<1x32xf32> to vector<16x32xf32>
    %257 = arith.mulf %255, %256 : vector<16x32xf32>
    %258 = vector.broadcast %237 : vector<1x32xf32> to vector<16x32xf32>
    %259 = arith.addf %257, %258 : vector<16x32xf32>
    %260 = arith.addf %32, %259 : vector<16x32xf32>
    %c0_105 = arith.constant 0 : index
    %c0_106 = arith.constant 0 : index
    %261 = vector.load %arg9[%c0_105, %c0_106] : memref<1x32xf32, #tpu.memory_space<vmem>>, vector<1x32xf32>
    %c0_107 = arith.constant 0 : index
    %c0_108 = arith.constant 0 : index
    %262 = vector.load %arg10[%c0_107, %c0_108] : memref<1x32xf32, #tpu.memory_space<vmem>>, vector<1x32xf32>
    %cst_109 = arith.constant dense<0.000000e+00> : vector<16xf32>
    %263 = vector.multi_reduction <add>, %260, %cst_109 [1] : vector<16x32xf32> to vector<16xf32>
    %264 = vector.shape_cast %263 : vector<16xf32> to vector<16x1xf32>
    %cst_110 = arith.constant 3.200000e+01 : f32
    %265 = vector.broadcast %cst_110 : f32 to vector<16x1xf32>
    %266 = arith.divf %264, %265 : vector<16x1xf32>
    %267 = vector.broadcast %266 : vector<16x1xf32> to vector<16x32xf32>
    %268 = arith.subf %260, %267 : vector<16x32xf32>
    %269 = arith.mulf %268, %268 : vector<16x32xf32>
    %cst_111 = arith.constant dense<0.000000e+00> : vector<16xf32>
    %270 = vector.multi_reduction <add>, %269, %cst_111 [1] : vector<16x32xf32> to vector<16xf32>
    %271 = vector.shape_cast %270 : vector<16xf32> to vector<16x1xf32>
    %cst_112 = arith.constant 3.200000e+01 : f32
    %272 = vector.broadcast %cst_112 : f32 to vector<16x1xf32>
    %273 = arith.divf %271, %272 : vector<16x1xf32>
    %274 = vector.broadcast %266 : vector<16x1xf32> to vector<16x32xf32>
    %275 = arith.subf %260, %274 : vector<16x32xf32>
    %cst_113 = arith.constant 9.99999974E-6 : f32
    %276 = vector.broadcast %cst_113 : f32 to vector<16x1xf32>
    %277 = arith.addf %273, %276 : vector<16x1xf32>
    %278 = math.rsqrt %277 : vector<16x1xf32>
    %279 = vector.broadcast %278 : vector<16x1xf32> to vector<16x32xf32>
    %280 = arith.mulf %275, %279 : vector<16x32xf32>
    %281 = vector.broadcast %261 : vector<1x32xf32> to vector<16x32xf32>
    %282 = arith.mulf %280, %281 : vector<16x32xf32>
    %283 = vector.broadcast %262 : vector<1x32xf32> to vector<16x32xf32>
    %284 = arith.addf %282, %283 : vector<16x32xf32>
    %c0_114 = arith.constant 0 : index
    %c0_115 = arith.constant 0 : index
    %c0_116 = arith.constant 0 : index
    %285 = vector.load %arg5[%c0_114, %c0_115, %c0_116] : memref<1x32x32xf32, #tpu.memory_space<vmem>>, vector<1x32x32xf32>
    %286 = vector.shape_cast %285 : vector<1x32x32xf32> to vector<32x32xf32>
    %cst_117 = arith.constant dense<0.000000e+00> : vector<16x32xf32>
    %287 = tpu.matmul %284, %286, %cst_117 {dimension_numbers = #tpu.dot_dimension_numbers<[1], [0], [0], [1], [0, 0, 1, 1], [], []>} : vector<16x32xf32>, vector<32x32xf32>, vector<16x32xf32> -> vector<16x32xf32>
    %c0_118 = arith.constant 0 : index
    %c0_119 = arith.constant 0 : index
    %c0_120 = arith.constant 0 : index
    %288 = vector.load %arg6[%c0_118, %c0_119, %c0_120] : memref<1x1x32xf32, #tpu.memory_space<vmem>>, vector<1x1x32xf32>
    %289 = vector.shape_cast %288 : vector<1x1x32xf32> to vector<1x32xf32>
    %290 = vector.broadcast %289 : vector<1x32xf32> to vector<16x32xf32>
    %291 = arith.addf %287, %290 : vector<16x32xf32>
    %292 = arith.addf %291, %284 : vector<16x32xf32>
    %c0_121 = arith.constant 0 : index
    %c0_122 = arith.constant 0 : index
    %293 = vector.load %arg11[%c0_121, %c0_122] : memref<1x32xf32, #tpu.memory_space<vmem>>, vector<1x32xf32>
    %c0_123 = arith.constant 0 : index
    %c0_124 = arith.constant 0 : index
    %294 = vector.load %arg12[%c0_123, %c0_124] : memref<1x32xf32, #tpu.memory_space<vmem>>, vector<1x32xf32>
    %cst_125 = arith.constant dense<0.000000e+00> : vector<16xf32>
    %295 = vector.multi_reduction <add>, %292, %cst_125 [1] : vector<16x32xf32> to vector<16xf32>
    %296 = vector.shape_cast %295 : vector<16xf32> to vector<16x1xf32>
    %cst_126 = arith.constant 3.200000e+01 : f32
    %297 = vector.broadcast %cst_126 : f32 to vector<16x1xf32>
    %298 = arith.divf %296, %297 : vector<16x1xf32>
    %299 = vector.broadcast %298 : vector<16x1xf32> to vector<16x32xf32>
    %300 = arith.subf %292, %299 : vector<16x32xf32>
    %301 = arith.mulf %300, %300 : vector<16x32xf32>
    %cst_127 = arith.constant dense<0.000000e+00> : vector<16xf32>
    %302 = vector.multi_reduction <add>, %301, %cst_127 [1] : vector<16x32xf32> to vector<16xf32>
    %303 = vector.shape_cast %302 : vector<16xf32> to vector<16x1xf32>
    %cst_128 = arith.constant 3.200000e+01 : f32
    %304 = vector.broadcast %cst_128 : f32 to vector<16x1xf32>
    %305 = arith.divf %303, %304 : vector<16x1xf32>
    %306 = vector.broadcast %298 : vector<16x1xf32> to vector<16x32xf32>
    %307 = arith.subf %292, %306 : vector<16x32xf32>
    %cst_129 = arith.constant 9.99999974E-6 : f32
    %308 = vector.broadcast %cst_129 : f32 to vector<16x1xf32>
    %309 = arith.addf %305, %308 : vector<16x1xf32>
    %310 = math.rsqrt %309 : vector<16x1xf32>
    %311 = vector.broadcast %310 : vector<16x1xf32> to vector<16x32xf32>
    %312 = arith.mulf %307, %311 : vector<16x32xf32>
    %313 = vector.broadcast %293 : vector<1x32xf32> to vector<16x32xf32>
    %314 = arith.mulf %312, %313 : vector<16x32xf32>
    %315 = vector.broadcast %294 : vector<1x32xf32> to vector<16x32xf32>
    %316 = arith.addf %314, %315 : vector<16x32xf32>
    %c0_130 = arith.constant 0 : index
    %c0_131 = arith.constant 0 : index
    %c0_132 = arith.constant 0 : index
    %317 = vector.load %arg29[%c0_130, %c0_131, %c0_132] : memref<1x16x32xf32, #tpu.memory_space<vmem>>, vector<1x16x32xf32>
    %318 = vector.shape_cast %317 : vector<1x16x32xf32> to vector<16x32xf32>
    %319 = vector.shape_cast %316 : vector<16x32xf32> to vector<1x16x32xf32>
    tpu.vector_store %arg29[%c0_130, %c0_131, %c0_132], %319 {strides = array<i32>} : memref<1x16x32xf32, #tpu.memory_space<vmem>>, vector<1x16x32xf32>,
    return
  }
  func.func @transform_0(%arg0: i32, %arg1: i32) -> (i32, i32) {
    %c0_i32 = arith.constant 0 : i32
    %c0_i32_0 = arith.constant 0 : i32
    return %arg1, %c0_i32 : i32, i32
  }
  func.func @transform_1(%arg0: i32, %arg1: i32) -> (i32, i32, i32) {
    %c0_i32 = arith.constant 0 : i32
    %c0_i32_0 = arith.constant 0 : i32
    %c0_i32_1 = arith.constant 0 : i32
    return %arg0, %c0_i32, %c0_i32_0 : i32, i32, i32
  }
  func.func @transform_2(%arg0: i32, %arg1: i32) -> (i32, i32, i32) {
    %c0_i32 = arith.constant 0 : i32
    %c0_i32_0 = arith.constant 0 : i32
    %c0_i32_1 = arith.constant 0 : i32
    return %arg0, %c0_i32, %c0_i32_0 : i32, i32, i32
  }
  func.func @transform_3(%arg0: i32, %arg1: i32) -> (i32, i32, i32) {
    %c0_i32 = arith.constant 0 : i32
    %c0_i32_0 = arith.constant 0 : i32
    %c0_i32_1 = arith.constant 0 : i32
    return %arg0, %c0_i32, %c0_i32_0 : i32, i32, i32
  }
  func.func @transform_4(%arg0: i32, %arg1: i32) -> (i32, i32, i32) {
    %c0_i32 = arith.constant 0 : i32
    %c0_i32_0 = arith.constant 0 : i32
    %c0_i32_1 = arith.constant 0 : i32
    return %arg0, %c0_i32, %c0_i32_0 : i32, i32, i32
  }
  func.func @transform_5(%arg0: i32, %arg1: i32) -> (i32, i32) {
    %c0_i32 = arith.constant 0 : i32
    %c0_i32_0 = arith.constant 0 : i32
    %c0_i32_1 = arith.constant 0 : i32
    return %c0_i32, %c0_i32_0 : i32, i32
  }
  func.func @transform_6(%arg0: i32, %arg1: i32) -> (i32, i32) {
    %c0_i32 = arith.constant 0 : i32
    %c0_i32_0 = arith.constant 0 : i32
    %c0_i32_1 = arith.constant 0 : i32
    return %c0_i32, %c0_i32_0 : i32, i32
  }
  func.func @transform_7(%arg0: i32, %arg1: i32) -> (i32, i32) {
    %c0_i32 = arith.constant 0 : i32
    %c0_i32_0 = arith.constant 0 : i32
    %c0_i32_1 = arith.constant 0 : i32
    return %c0_i32, %c0_i32_0 : i32, i32
  }
  func.func @transform_8(%arg0: i32, %arg1: i32) -> (i32, i32) {
    %c0_i32 = arith.constant 0 : i32
    %c0_i32_0 = arith.constant 0 : i32
    %c0_i32_1 = arith.constant 0 : i32
    return %c0_i32, %c0_i32_0 : i32, i32
  }
  func.func @transform_9(%arg0: i32, %arg1: i32) -> (i32, i32) {
    %c0_i32 = arith.constant 0 : i32
    %c0_i32_0 = arith.constant 0 : i32
    %c0_i32_1 = arith.constant 0 : i32
    return %c0_i32, %c0_i32_0 : i32, i32
  }
  func.func @transform_10(%arg0: i32, %arg1: i32) -> (i32, i32) {
    %c0_i32 = arith.constant 0 : i32
    %c0_i32_0 = arith.constant 0 : i32
    %c0_i32_1 = arith.constant 0 : i32
    return %c0_i32, %c0_i32_0 : i32, i32
  }
  func.func @transform_11(%arg0: i32, %arg1: i32) -> (i32, i32) {
    %c0_i32 = arith.constant 0 : i32
    %c0_i32_0 = arith.constant 0 : i32
    %c0_i32_1 = arith.constant 0 : i32
    return %c0_i32, %c0_i32_0 : i32, i32
  }
  func.func @transform_12(%arg0: i32, %arg1: i32) -> (i32, i32) {
    %c0_i32 = arith.constant 0 : i32
    %c0_i32_0 = arith.constant 0 : i32
    %c0_i32_1 = arith.constant 0 : i32
    return %c0_i32, %c0_i32_0 : i32, i32
  }
  func.func @transform_13(%arg0: i32, %arg1: i32) -> (i32, i32) {
    %c0_i32 = arith.constant 0 : i32
    %c0_i32_0 = arith.constant 0 : i32
    %c0_i32_1 = arith.constant 0 : i32
    return %c0_i32, %c0_i32_0 : i32, i32
  }
  func.func @transform_14(%arg0: i32, %arg1: i32) -> (i32, i32) {
    %c0_i32 = arith.constant 0 : i32
    %c0_i32_0 = arith.constant 0 : i32
    %c0_i32_1 = arith.constant 0 : i32
    return %c0_i32, %c0_i32_0 : i32, i32
  }
  func.func @transform_15(%arg0: i32, %arg1: i32) -> (i32, i32) {
    %c0_i32 = arith.constant 0 : i32
    %c0_i32_0 = arith.constant 0 : i32
    %c0_i32_1 = arith.constant 0 : i32
    return %c0_i32, %c0_i32_0 : i32, i32
  }
  func.func @transform_16(%arg0: i32, %arg1: i32) -> (i32, i32) {
    %c0_i32 = arith.constant 0 : i32
    %c0_i32_0 = arith.constant 0 : i32
    %c0_i32_1 = arith.constant 0 : i32
    return %c0_i32, %c0_i32_0 : i32, i32
  }
  func.func @transform_17(%arg0: i32, %arg1: i32) -> (i32, i32) {
    %c0_i32 = arith.constant 0 : i32
    %c0_i32_0 = arith.constant 0 : i32
    %c0_i32_1 = arith.constant 0 : i32
    return %c0_i32, %c0_i32_0 : i32, i32
  }
  func.func @transform_18(%arg0: i32, %arg1: i32) -> (i32, i32) {
    %c0_i32 = arith.constant 0 : i32
    %c0_i32_0 = arith.constant 0 : i32
    %c0_i32_1 = arith.constant 0 : i32
    return %c0_i32, %c0_i32_0 : i32, i32
  }
  func.func @transform_19(%arg0: i32, %arg1: i32) -> (i32, i32) {
    %c0_i32 = arith.constant 0 : i32
    %c0_i32_0 = arith.constant 0 : i32
    %c0_i32_1 = arith.constant 0 : i32
    return %c0_i32, %c0_i32_0 : i32, i32
  }
  func.func @transform_20(%arg0: i32, %arg1: i32) -> (i32, i32) {
    %c0_i32 = arith.constant 0 : i32
    %c0_i32_0 = arith.constant 0 : i32
    %c0_i32_1 = arith.constant 0 : i32
    return %c0_i32, %c0_i32_0 : i32, i32
  }
  func.func @transform_21(%arg0: i32, %arg1: i32) -> (i32, i32) {
    %c0_i32 = arith.constant 0 : i32
    %c0_i32_0 = arith.constant 0 : i32
    %c0_i32_1 = arith.constant 0 : i32
    return %c0_i32, %c0_i32_0 : i32, i32
  }
  func.func @transform_22(%arg0: i32, %arg1: i32) -> (i32, i32) {
    %c0_i32 = arith.constant 0 : i32
    %c0_i32_0 = arith.constant 0 : i32
    %c0_i32_1 = arith.constant 0 : i32
    return %c0_i32, %c0_i32_0 : i32, i32
  }
  func.func @transform_23(%arg0: i32, %arg1: i32) -> (i32, i32) {
    %c0_i32 = arith.constant 0 : i32
    %c0_i32_0 = arith.constant 0 : i32
    %c0_i32_1 = arith.constant 0 : i32
    return %c0_i32, %c0_i32_0 : i32, i32
  }
  func.func @transform_24(%arg0: i32, %arg1: i32) -> (i32, i32) {
    %c0_i32 = arith.constant 0 : i32
    %c0_i32_0 = arith.constant 0 : i32
    %c0_i32_1 = arith.constant 0 : i32
    return %c0_i32, %c0_i32_0 : i32, i32
  }
  func.func @transform_25(%arg0: i32, %arg1: i32) -> (i32, i32) {
    %c0_i32 = arith.constant 0 : i32
    %c0_i32_0 = arith.constant 0 : i32
    %c0_i32_1 = arith.constant 0 : i32
    return %c0_i32, %c0_i32_0 : i32, i32
  }
  func.func @transform_26(%arg0: i32, %arg1: i32) -> (i32, i32) {
    %c0_i32 = arith.constant 0 : i32
    %c0_i32_0 = arith.constant 0 : i32
    %c0_i32_1 = arith.constant 0 : i32
    return %c0_i32, %c0_i32_0 : i32, i32
  }
  func.func @transform_27(%arg0: i32, %arg1: i32) -> (i32, i32, i32) {
    %c0_i32 = arith.constant 0 : i32
    %c0_i32_0 = arith.constant 0 : i32
    return %arg0, %arg1, %c0_i32 : i32, i32, i32
  }
}

</mosaic_0001>

<bundles_post_ra>
// kernel: _lambda_.3
= control target key start
LH: loop header
LB: loop body
LE: loop exit
PB: predicated region body
PF: predicated region fallthrough
CT: control target
= control target key end

     0   :  { %vm38_vm0 = vcmask 261120   ;;  %s170_s0 = inlined_call_operand.vmem [shape: f32[5,16,32], index: 0, kind: input, shape index: {}]   ;;  %s171_s1 = inlined_call_operand.vmem [shape: f32[1,32], index: 1, kind: input, shape index: {}]   ;;  %s172_s2 = inlined_call_operand.vmem [shape: f32[1,32], index: 2, kind: input, shape index: {}]   ;;  %s173_s3 = inlined_call_operand.vmem [shape: f32[16,32], index: 3, kind: output, shape index: {}]  }
   0x1   :  { %v14_v0 = vld [vmem:[%s170_s0] sm:$0xff]  ;;  %v88_v1 = vld [vmem:[%s170_s0 + $0x10] sm:$0xff]  ;;  %v15_v4 = vld [vmem:[%s170_s0 + $0x8] sm:$0xff] }
   0x2   :  { %v90_v2 = vld [vmem:[%s170_s0 + $0x20] sm:$0xff]  ;;  %v19_v3 = vadd.f32 %v88_v1, %v14_v0  ;;  %v92_v5 = vld [vmem:[%s170_s0 + $0x30] sm:$0xff]  ;;  %v89_v6 = vld [vmem:[%s170_s0 + $0x18] sm:$0xff] }
   0x3   :  { %v91_v7 = vld [vmem:[%s170_s0 + $0x28] sm:$0xff]  ;;  %v20_v9 = vadd.f32 %v89_v6, %v15_v4  ;;  %v94_v10 = vld [vmem:[%s170_s0 + $0x40] sm:$0xff]  ;;  %v93_v11 = vld [vmem:[%s170_s0 + $0x38] sm:$0xff] }
   0x4   :  { %v24_v8 = vadd.f32 %v90_v2, %v19_v3  ;;  %v95_v14 = vld [vmem:[%s170_s0 + $0x48] sm:$0xff]  ;;  %v96_v37 = vld [vmem:[%s171_s1] ss:$0 sm:$0xff] }
   0x5   :  { %v25_v13 = vadd.f32 %v91_v7, %v20_v9  ;;  %v97_v39 = vld [vmem:[%s172_s2] ss:$0 sm:$0xff] }
   0x6   :  { %v29_v12 = vadd.f32 %v92_v5, %v24_v8 }
   0x7   :  { %v30_v16 = vadd.f32 %v93_v11, %v25_v13 }
   0x8   :  { %v34_v15 = vadd.f32 %v94_v10, %v29_v12 }
   0x9   :  { %v35_v18 = vadd.f32 %v95_v14, %v30_v16 }
   0xa   :  { %v39_v17 = vsel %vm38_vm0, %v34_v15, 0.0 }
   0xb   :  { %40 = vadd.xlane.f32.xlu0 %v39_v17  ;;  %v42_v19 = vsel %vm38_vm0, %v35_v18, 0.0 }
   0xf   :  { %43 = vadd.xlane.f32.xlu0 %v42_v19 }
  0x98   :  { %v41_v20 = vpop.xlane.xlu0 %40 }
  0x99   :  { %v46_v21 = vmul.f32 0.03125, %v41_v20 }
  0x9b   :  { %v48_v22 = vsub.f32 %v34_v15, %v46_v21 }
  0x9c   :  { %v44_v23 = vpop.xlane.xlu0 %43 }
  0x9d   :  { %v47_v24 = vmul.f32 0.03125, %v44_v23  ;;  %v50_v25 = vmul.f32 %v48_v22, %v48_v22 }
  0x9f   :  { %v49_v26 = vsub.f32 %v35_v18, %v47_v24  ;;  %v52_v27 = vsel %vm38_vm0, %v50_v25, 0.0 }
  0xa0   :  { %53 = vadd.xlane.f32.xlu1 %v52_v27 }
  0xa1   :  { %v51_v28 = vmul.f32 %v49_v26, %v49_v26 }
  0xa3   :  { %v55_v29 = vsel %vm38_vm0, %v51_v28, 0.0 }
  0xa4   :  { %56 = vadd.xlane.f32.xlu1 %v55_v29 }
 0x12d   :  { %v54_v30 = vpop.xlane.xlu1 %53 }
 0x12e   :  { %v58_v31 = vmul.f32 0.03125, %v54_v30 }
 0x130   :  { %v60_v32 = vadd.f32 1e-05, %v58_v31 }
 0x131   :  { %v57_v33 = vpop.xlane.xlu1 %56 }
 0x132   :  { %98 = vrsqrt.f32 %v60_v32  ;;  %v59_v34 = vmul.f32 0.03125, %v57_v33 }
 0x134   :  { %v61_v35 = vadd.f32 1e-05, %v59_v34 }
 0x136   :  { %100 = vrsqrt.f32 %v61_v35 }
 0x13c   :  { %v99_v36 = vpop.eup %98 }
 0x13d   :  { %v64_v38 = vmul.f32 %v99_v36, %v48_v22 }
 0x13f   :  { %v72_v40 = vmul.f32 %v96_v37, %v64_v38 }
 0x140   :  { %v101_v41 = vpop.eup %100 }
 0x141   :  { %v80_v42 = vadd.f32 %v97_v39, %v72_v40  ;;  %v65_v43 = vmul.f32 %v101_v41, %v49_v26 }
 0x143   :  { %82 = vst.msk [vmem:[%s173_s3] sm:$0xff] %vm38_vm0, %v80_v42  ;;  %v73_v44 = vmul.f32 %v96_v37, %v65_v43 }
 0x145   :  { %v81_v45 = vadd.f32 %v97_v39, %v73_v44 }
 0x147   :  { %83 = vst.msk [vmem:[%s173_s3 + $0x8] sm:$0xff] %vm38_vm0, %v81_v45 }

// kernel: _lambda_.2
= control target key start
LH: loop header
LB: loop body
LE: loop exit
PB: predicated region body
PF: predicated region fallthrough
CT: control target
= control target key end

     0   :  { %s5501_s0 = inlined_call_operand.vmem [shape: f32[16,32], index: 0, kind: input, shape index: {}]   ;;  %s5502_s1 = inlined_call_operand.hbm [shape: f32[5,32,32], index: 1, kind: input, shape index: {}]   ;;  %s5503_s2 = inlined_call_operand.vmem [shape: f32[5,1,32], index: 2, kind: input, shape index: {}]   ;;  %s5504_s3 = inlined_call_operand.hbm [shape: f32[5,32,32], index: 3, kind: input, shape index: {}]   ;;  %s5505_s4 = inlined_call_operand.vmem [shape: f32[5,1,32], index: 4, kind: input, shape index: {}]   ;;  %s5506_s5 = inlined_call_operand.vmem [shape: f32[1,32], index: 5, kind: input, shape index: {}, may-alias: {5,7,9,19,21}]   ;;  %s5507_s6 = inlined_call_operand.vmem [shape: f32[1,32], index: 6, kind: input, shape index: {}, may-alias: {6,8,10,20,22}]   ;;  %s5508_s7 = inlined_call_operand.vmem [shape: f32[1,32], index: 7, kind: input, shape index: {}, may-alias: {5,7,9,19,21}]   ;;  %s5509_s8 = inlined_call_operand.vmem [shape: f32[1,32], index: 8, kind: input, shape index: {}, may-alias: {6,8,10,20,22}]   ;;  %s5510_s9 = inlined_call_operand.vmem [shape: f32[1,32], index: 9, kind: input, shape index: {}, may-alias: {5,7,9,19,21}]   ;;  %s5511_s10 = inlined_call_operand.vmem [shape: f32[1,32], index: 10, kind: input, shape index: {}, may-alias: {6,8,10,20,22}]   ;;  %s5512_s11 = inlined_call_operand.hbm [shape: f32[32,32], index: 11, kind: input, shape index: {}]   ;;  %s5513_s12 = inlined_call_operand.hbm [shape: f32[1,32], index: 12, kind: input, shape index: {}]   ;;  %s5514_s13 = inlined_call_operand.hbm [shape: f32[32,32], index: 13, kind: input, shape index: {}]   ;;  %s5515_s14 = inlined_call_operand.hbm [shape: f32[1,32], index: 14, kind: input, shape index: {}]   ;;  %s5516_s15 = inlined_call_operand.hbm [shape: f32[32,32], index: 15, kind: input, shape index: {}]   ;;  %s5517_s16 = inlined_call_operand.hbm [shape: f32[1,32], index: 16, kind: input, shape index: {}]   ;;  %s5518_s17 = inlined_call_operand.hbm [shape: f32[32,32], index: 17, kind: input, shape index: {}]   ;;  %s5519_s18 = inlined_call_operand.hbm [shape: f32[1,32], index: 18, kind: input, shape index: {}]   ;;  %s5520_s19 = inlined_call_operand.vmem [shape: f32[1,32], index: 19, kind: input, shape index: {}, may-alias: {5,7,9,19,21}]   ;;  %s5521_s20 = inlined_call_operand.vmem [shape: f32[1,32], index: 20, kind: input, shape index: {}, may-alias: {6,8,10,20,22}]   ;;  %s5522_s21 = inlined_call_operand.vmem [shape: f32[1,32], index: 21, kind: input, shape index: {}, may-alias: {5,7,9,19,21}]   ;;  %s5523_s22 = inlined_call_operand.vmem [shape: f32[1,32], index: 22, kind: input, shape index: {}, may-alias: {6,8,10,20,22}]   ;;  %s5524_s23 = inlined_call_operand.vmem [shape: f32[32,64], index: 23, kind: input, shape index: {}]   ;;  %s5525_s24 = inlined_call_operand.hbm [shape: f32[1,64], index: 24, kind: input, shape index: {}]   ;;  %s5526_s25 = inlined_call_operand.vmem [shape: f32[64,32], index: 25, kind: input, shape index: {}]   ;;  %s5527_s26 = inlined_call_operand.vmem [shape: f32[1,32], index: 26, kind: input, shape index: {}]   ;;  %s5528_s27 = inlined_call_operand.vmem [shape: f32[5,16,32], index: 27, kind: output, shape index: {}]  }
   0x1   :  { %5545 = sst [smem:[#allocation28_spill]] %s5501_s0 }
   0x2   :  { %5546 = sst [smem:[#allocation29_spill]] %s5502_s1 }
   0x3   :  { %5547 = sst [smem:[#allocation30_spill]] %s5503_s2 }
   0x4   :  { %5548 = sst [smem:[#allocation31_spill]] %s5504_s3 }
   0x5   :  { %5549 = sst [smem:[#allocation32_spill]] %s5505_s4 }
   0x6   :  { %5550 = sst [smem:[#allocation33_spill]] %s5506_s5 }
   0x7   :  { %5551 = sst [smem:[#allocation34_spill]] %s5507_s6 }
   0x8   :  { %5552 = sst [smem:[#allocation35_spill]] %s5508_s7 }
   0x9   :  { %5553 = sst [smem:[#allocation36_spill]] %s5509_s8 }
   0xa   :  { %5554 = sst [smem:[#allocation37_spill]] %s5510_s9 }
   0xb   :  { %5555 = sst [smem:[#allocation38_spill]] %s5511_s10 }
   0xc   :  { %5556 = sst [smem:[#allocation39_spill]] %s5512_s11 }
   0xd   :  { %5557 = sst [smem:[#allocation40_spill]] %s5513_s12 }
   0xe   :  { %5558 = sst [smem:[#allocation41_spill]] %s5514_s13 }
   0xf   :  { %5559 = sst [smem:[#allocation42_spill]] %s5515_s14 }
  0x10   :  { %5560 = sst [smem:[#allocation43_spill]] %s5516_s15 }
  0x11   :  { %5561 = sst [smem:[#allocation44_spill]] %s5517_s16 }
  0x12   :  { %5562 = sst [smem:[#allocation45_spill]] %s5518_s17 }
  0x13   :  { %5563 = sst [smem:[#allocation46_spill]] %s5520_s19 }
  0x14   :  { %5564 = sst [smem:[#allocation47_spill]] %s5521_s20 }
  0x15   :  { %5565 = sst [smem:[#allocation48_spill]] %s5522_s21 }
  0x16   :  { %5566 = sst [smem:[#allocation49_spill]] %s5523_s22 }
  0x17   :  { %5567 = sst [smem:[#allocation50_spill]] %s5524_s23 }
  0x18   :  { %5568 = sst [smem:[#allocation51_spill]] %s5526_s25 }
  0x19   :  { %5569 = sst [smem:[#allocation52_spill]] %s5527_s26 }
  0x1a   :  { %5570 = sst [smem:[#allocation53_spill]] %s5528_s27 }
  0x1b   :  { %32 = vsyncpa [#allocation3], 0 }
  0x1c   :  { %34 = vsyncpa [#allocation3 + $0x1], 0 }
  0x1d   :  { %35 = vsyncpa [#allocation5], 0 }
  0x1e   :  { %37 = vsyncpa [#allocation5 + $0x1], 0 }
  0x1f   :  { %38 = vsyncpa [#allocation8], 0 }
  0x20   :  { %39 = vsyncpa [#allocation11], 0 }
  0x21   :  { %40 = vsyncpa [#allocation14], 0 }
  0x22   :  { %41 = vsyncpa [#allocation17], 0  ;;  %s4810_s7 = smov 0   ;;  %s4812_s4 = smov 0  }
  0x23   :  { %s4814_s8 = smov 0   ;;  %s4816_s30 = smov 0  }
  0x24   :  { %s4818_s9 = smov 0   ;;  %s4820_s5 = smov 0  }
  0x25 LB: > { %5571 = sst [smem:[#allocation26_spill]] %s4639_s30  ;;  %s5533_s28 = sadd.s32 4294967295, %s4647_s5   ;;  %s4647_s5 = sphi %s4820_s5, %s47_s5   ;;  %s4643_s9 = sphi %s4818_s9, %s5619_s9   ;;  %s4639_s30 = sphi %s4816_s30, %s5618_s30   ;;  %s4635_s8 = sphi %s4814_s8, %s5617_s8   ;;  %s4631_s4 = sphi %s4812_s4, %s5616_s4   ;;  %s4627_s7 = sphi %s4810_s7, %s5615_s7  }
  0x26   : > { %p3621_p0 = scmp.ge.s32.totalorder %s4647_s5, 1  ;;  %p4844_p1 = scmp.eq.s32.totalorder %s5533_s28, 0 }
  0x27   : > { %p684_p2 = scmp.lt.s32.totalorder %s4647_s5, 6  ;;  %s4649_s29 = smov [#allocation6]  }
  0x28   : > { %s5572_s0 = scalar_select %p4844_p1, 1, 0 }
  0x29   : > { %p4849_p3 = pnand %p3621_p0, %p684_p2  ;;  %s723_s1 = sshll.u32 %s4649_s29, 4  ;;  %s4853_s1 = int_to_ptr.vmem [resolvable:$true] %s723_s1 }
  0x2a   : > { %s4650_s11 = smov [#allocation7]   ;;  %s4651_s3 = smov [#allocation10]  }
  0x2b   : > { %s5573_s10 = scalar_select %p4849_p3, 1, 0 }
  0x2c   : > { %p4088_p4 = pneg %p4849_p3  ;;  %s737_s2 = sshll.u32 %s4650_s11, 4  ;;  %s4863_s2 = int_to_ptr.vmem [resolvable:$true] %s737_s2 }
  0x2d   : > { %5574 = sst [smem:[#allocation27_spill]] %s5573_s10  ;;  %s4865_s28 = sshll.u32 %s4651_s3, 4  ;;  %s762_s28 = int_to_ptr.vmem [resolvable:$true] %s4865_s28 }
  0x2e   : > { %p4859_p5 = pnand %p4088_p4, %p4844_p1  ;;  %s5576_s29 = sld [smem:[#allocation39_spill]] }
  0x30   : > { %p4875_p7 = pneg %p4859_p5 }
  0x34   : > { %s4261_s21 = scalar_lea.hbm %s5576_s29, 512 }
  0x35   : > { %p4262_p6 = scmp.ne.s32.totalorder %s5576_s29, %s4261_s21  ;;  %p4268_p10 = scmp.lt.u32.totalorder %s4261_s21, %s5576_s29 }
  0x37   : > { %p4264_p8 = pnand %p4875_p7, %p4262_p6 }
  0x39   : > { %p4265_p9 = pneg %p4264_p8 }
  0x3b   : > { %p4270_p11 = pnand %p4268_p10, %p4265_p9 }
  0x3d   : > { %4273 = shalt.err (!%p4270_p11)
}
  0x3e   : > { %s4274_s20 = scalar_lea.vmem %s4853_s1, 512  ;;  %p4282_p2 = scmp.lt.s32.totalorder %s4853_s1, %s4853_s1 }
  0x3f   : > { %p4275_p12 = scmp.ne.s32.totalorder %s4853_s1, %s4274_s20  ;;  %p4283_p4 = scmp.lt.s32.totalorder %s4274_s20, %s4274_s20 }
  0x41   : > { %p4277_p13 = pnand %p4275_p12, %p4875_p7  ;;  %p4284_p6 = por %p4283_p4, %p4282_p2 }
  0x43   : > { %p4278_p0 = pneg %p4277_p13 }
  0x45   : > { %p4285_p8 = pnand %p4284_p6, %p4278_p0 }
  0x47   : > { %4288 = shalt.err (!%p4285_p8)
}
  0x48   : > { %s5541_s22 = smov 128   ;;  %s5543_s21 = smov 8  }
  0x49   : > { %4091 = dma.hbm_to_vmem [thread:$0]  (!%p4859_p5), %s5576_s29, 512, %s4853_s1, [#allocation5], %s5541_s22, %s5541_s22, %s5543_s21  }
  0x4a   : > { %s5578_s12 = sld [smem:[#allocation40_spill]] }
  0x50   : > { %s4289_s20 = scalar_lea.hbm %s5578_s12, 16 }
  0x51   : > { %p4290_p9 = scmp.ne.s32.totalorder %s5578_s12, %s4289_s20  ;;  %p4296_p12 = scmp.lt.u32.totalorder %s4289_s20, %s5578_s12 }
  0x53   : > { %p4292_p10 = pnand %p4290_p9, %p4875_p7 }
  0x55   : > { %p4293_p11 = pneg %p4292_p10 }
  0x57   : > { %p4298_p13 = pnand %p4296_p12, %p4293_p11 }
  0x59   : > { %4301 = shalt.err (!%p4298_p13)
}
  0x5a   : > { %s4302_s1 = scalar_lea.vmem %s4863_s2, 16  ;;  %s4309_s23 = scalar_lea.vmem %s4863_s2, 32 }
  0x5b   : > { %p4303_p0 = scmp.ne.s32.totalorder %s4863_s2, %s4302_s1  ;;  %p4310_p6 = scmp.lt.s32.totalorder %s4863_s2, %s4863_s2 }
  0x5c   : > { %p4311_p8 = scmp.lt.s32.totalorder %s4309_s23, %s4302_s1 }
  0x5d   : > { %p4305_p2 = pnand %p4303_p0, %p4875_p7 }
  0x5e   : > { %p4312_p9 = por %p4311_p8, %p4310_p6 }
  0x5f   : > { %p4306_p4 = pneg %p4305_p2 }
  0x61   : > { %p4313_p10 = pnand %p4312_p9, %p4306_p4 }
  0x63   : > { %4316 = shalt.err (!%p4313_p10)
}
  0x64   : > { %4094 = dma.hbm_to_vmem [thread:$0]  (!%p4859_p5), %s5578_s12, 16, %s4863_s2, [#allocation8]  }
  0x65   : > { %s5579_s14 = sld [smem:[#allocation42_spill]] }
  0x6b   : > { %s4317_s27 = scalar_lea.hbm %s5579_s14, 16 }
  0x6c   : > { %p4318_p11 = scmp.ne.s32.totalorder %s5579_s14, %s4317_s27  ;;  %p4324_p0 = scmp.lt.u32.totalorder %s4317_s27, %s5579_s14 }
  0x6e   : > { %p4320_p12 = pnand %p4318_p11, %p4875_p7 }
  0x70   : > { %p4321_p13 = pneg %p4320_p12 }
  0x72   : > { %p4326_p2 = pnand %p4324_p0, %p4321_p13 }
  0x74   : > { %4329 = shalt.err (!%p4326_p2)
}
  0x75   : > { %s4330_s23 = scalar_lea.vmem %s762_s28, 16  ;;  %s4337_s2 = scalar_lea.vmem %s762_s28, 32 }
  0x76   : > { %p4331_p4 = scmp.ne.s32.totalorder %s762_s28, %s4330_s23  ;;  %p4338_p9 = scmp.lt.s32.totalorder %s762_s28, %s762_s28 }
  0x77   : > { %p4339_p10 = scmp.lt.s32.totalorder %s4337_s2, %s4330_s23 }
  0x78   : > { %p4333_p6 = pnand %p4331_p4, %p4875_p7 }
  0x79   : > { %p4340_p3 = por %p4339_p10, %p4338_p9 }
  0x7a   : > { %p4334_p8 = pneg %p4333_p6 }
  0x7c   : > { %p4341_p1 = pnand %p4340_p3, %p4334_p8 }
  0x7e   : > { %4344 = shalt.err (!%p4341_p1)
}
  0x7f   : > { %4100 = dma.hbm_to_vmem [thread:$0]  (!%p4859_p5), %s5579_s14, 16, %s762_s28, [#allocation11]  }
  0x80   : > { %s4654_s10 = smov [#allocation13]   ;;  %s4655_s27 = smov [#allocation16]  }
  0x81   : > { %s785_s26 = sshll.u32 %s4654_s10, 4  ;;  %s809_s11 = sshll.u32 %s4655_s27, 4  ;;  %s786_s26 = int_to_ptr.vmem [resolvable:$true] %s785_s26  ;;  %s810_s11 = int_to_ptr.vmem [resolvable:$true] %s809_s11 }
  0x82   : > { %s5580_s16 = sld [smem:[#allocation44_spill]] }
  0x88   : > { %s4345_s1 = scalar_lea.hbm %s5580_s16, 16 }
  0x89   : > { %p4346_p1 = scmp.ne.s32.totalorder %s5580_s16, %s4345_s1  ;;  %p4352_p12 = scmp.lt.u32.totalorder %s4345_s1, %s5580_s16 }
  0x8b   : > { %p4348_p3 = pnand %p4346_p1, %p4875_p7 }
  0x8d   : > { %p4349_p11 = pneg %p4348_p3 }
  0x8f   : > { %p4354_p13 = pnand %p4352_p12, %p4349_p11 }
  0x91   : > { %4357 = shalt.err (!%p4354_p13)
}
  0x92   : > { %s4358_s28 = scalar_lea.vmem %s786_s26, 16  ;;  %s4365_s30 = scalar_lea.vmem %s786_s26, 32 }
  0x93   : > { %p4359_p0 = scmp.ne.s32.totalorder %s786_s26, %s4358_s28  ;;  %p4366_p6 = scmp.lt.s32.totalorder %s786_s26, %s786_s26 }
  0x94   : > { %p4367_p8 = scmp.lt.s32.totalorder %s4365_s30, %s4358_s28 }
  0x95   : > { %p4361_p2 = pnand %p4359_p0, %p4875_p7 }
  0x96   : > { %p4368_p9 = por %p4367_p8, %p4366_p6 }
  0x97   : > { %p4362_p4 = pneg %p4361_p2 }
  0x99   : > { %p4369_p10 = pnand %p4368_p9, %p4362_p4 }
  0x9b   : > { %4372 = shalt.err (!%p4369_p10)
}
  0x9c   : > { %4106 = dma.hbm_to_vmem [thread:$0]  (!%p4859_p5), %s5580_s16, 16, %s786_s26, [#allocation14]  }
  0x9d   : > { %s4373_s20 = scalar_lea.hbm %s5519_s18, 16 }
  0x9e   : > { %p4374_p1 = scmp.ne.s32.totalorder %s5519_s18, %s4373_s20  ;;  %p4380_p12 = scmp.lt.u32.totalorder %s4373_s20, %s5519_s18 }
  0xa0   : > { %p4376_p3 = pnand %p4374_p1, %p4875_p7 }
  0xa2   : > { %p4377_p11 = pneg %p4376_p3 }
  0xa4   : > { %p4382_p13 = pnand %p4380_p12, %p4377_p11 }
  0xa6   : > { %4385 = shalt.err (!%p4382_p13)
}
  0xa7   : > { %s4386_s28 = scalar_lea.vmem %s810_s11, 16  ;;  %s4393_s26 = scalar_lea.vmem %s810_s11, 32 }
  0xa8   : > { %p4387_p0 = scmp.ne.s32.totalorder %s810_s11, %s4386_s28  ;;  %p4394_p6 = scmp.lt.s32.totalorder %s810_s11, %s810_s11 }
  0xa9   : > { %p4395_p8 = scmp.lt.s32.totalorder %s4393_s26, %s4386_s28 }
  0xaa   : > { %p4389_p2 = pnand %p4387_p0, %p4875_p7 }
  0xab   : > { %p4396_p9 = por %p4395_p8, %p4394_p6 }
  0xac   : > { %p4390_p4 = pneg %p4389_p2 }
  0xae   : > { %p4397_p10 = pnand %p4396_p9, %p4390_p4 }
  0xb0   : > { %4400 = shalt.err (!%p4397_p10)
}
  0xb1   : > { %4112 = dma.hbm_to_vmem [thread:$0]  (!%p4859_p5), %s5519_s18, 16, %s810_s11, [#allocation17]  }
  0xb2   : > { %s4656_s27 = smov [#allocation9]   ;;  %s4657_s3 = smov [#allocation12]  }
  0xb3   : > { %s747_s22 = sshll.u32 %s4656_s27, 4  ;;  %s771_s20 = sshll.u32 %s4657_s3, 4  ;;  %s748_s22 = int_to_ptr.vmem [resolvable:$true] %s747_s22  ;;  %s772_s20 = int_to_ptr.vmem [resolvable:$true] %s771_s20 }
  0xb4   : > { %s5581_s13 = sld [smem:[#allocation41_spill]] }
  0xba   : > { %s4401_s2 = scalar_lea.hbm %s5581_s13, 512 }
  0xbb   : > { %p4402_p1 = scmp.ne.s32.totalorder %s5581_s13, %s4401_s2  ;;  %p4408_p12 = scmp.lt.u32.totalorder %s4401_s2, %s5581_s13 }
  0xbd   : > { %p4404_p3 = pnand %p4402_p1, %p4875_p7 }
  0xbf   : > { %p4405_p11 = pneg %p4404_p3 }
  0xc1   : > { %p4410_p13 = pnand %p4408_p12, %p4405_p11 }
  0xc3   : > { %4413 = shalt.err (!%p4410_p13)
}
  0xc4   : > { %s4414_s11 = scalar_lea.vmem %s748_s22, 512  ;;  %p4422_p6 = scmp.lt.s32.totalorder %s748_s22, %s748_s22 }
  0xc5   : > { %p4415_p0 = scmp.ne.s32.totalorder %s748_s22, %s4414_s11  ;;  %p4423_p8 = scmp.lt.s32.totalorder %s4414_s11, %s4414_s11 }
  0xc7   : > { %p4417_p2 = pnand %p4415_p0, %p4875_p7  ;;  %p4424_p9 = por %p4423_p8, %p4422_p6 }
  0xc9   : > { %p4418_p4 = pneg %p4417_p2 }
  0xcb   : > { %p4425_p10 = pnand %p4424_p9, %p4418_p4 }
  0xcd   : > { %4428 = shalt.err (!%p4425_p10)
}
  0xce   : > { %s5582_s10 = smov 128   ;;  %s5583_s15 = sld [smem:[#allocation43_spill]] }
  0xcf   : > { %4097 = dma.hbm_to_vmem [thread:$0]  (!%p4859_p5), %s5581_s13, 512, %s748_s22, [#allocation8], %s5582_s10, %s5582_s10, %s5543_s21  }
  0xd4   : > { %s4429_s2 = scalar_lea.hbm %s5583_s15, 512 }
  0xd5   : > { %p4430_p1 = scmp.ne.s32.totalorder %s5583_s15, %s4429_s2  ;;  %p4436_p12 = scmp.lt.u32.totalorder %s4429_s2, %s5583_s15 }
  0xd7   : > { %p4432_p3 = pnand %p4430_p1, %p4875_p7 }
  0xd9   : > { %p4433_p11 = pneg %p4432_p3 }
  0xdb   : > { %p4438_p13 = pnand %p4436_p12, %p4433_p11 }
  0xdd   : > { %4441 = shalt.err (!%p4438_p13)
}
  0xde   : > { %s4442_s11 = scalar_lea.vmem %s772_s20, 512  ;;  %p4450_p6 = scmp.lt.s32.totalorder %s772_s20, %s772_s20 }
  0xdf   : > { %p4443_p0 = scmp.ne.s32.totalorder %s772_s20, %s4442_s11  ;;  %p4451_p8 = scmp.lt.s32.totalorder %s4442_s11, %s4442_s11 }
  0xe1   : > { %p4445_p2 = pnand %p4443_p0, %p4875_p7  ;;  %p4452_p9 = por %p4451_p8, %p4450_p6 }
  0xe3   : > { %p4446_p4 = pneg %p4445_p2 }
  0xe5   : > { %p4453_p10 = pnand %p4452_p9, %p4446_p4 }
  0xe7   : > { %4456 = shalt.err (!%p4453_p10)
}
  0xe8   : > { %4103 = dma.hbm_to_vmem [thread:$0]  (!%p4859_p5), %s5583_s15, 512, %s772_s20, [#allocation11], %s5582_s10, %s5582_s10, %s5543_s21  }
  0xe9   : > { %s4658_s3 = smov [#allocation15]   ;;  %s4659_s23 = smov [#allocation18]  }
  0xea   : > { %s795_s1 = sshll.u32 %s4658_s3, 4  ;;  %s835_s2 = sshll.u32 %s4659_s23, 4  ;;  %s796_s1 = int_to_ptr.vmem [resolvable:$true] %s795_s1  ;;  %s836_s2 = int_to_ptr.vmem [resolvable:$true] %s835_s2 }
  0xeb   : > { %s5584_s17 = sld [smem:[#allocation45_spill]] }
  0xf1   : > { %s4457_s26 = scalar_lea.hbm %s5584_s17, 512 }
  0xf2   : > { %p4458_p1 = scmp.ne.s32.totalorder %s5584_s17, %s4457_s26  ;;  %p4464_p12 = scmp.lt.u32.totalorder %s4457_s26, %s5584_s17 }
  0xf4   : > { %p4460_p3 = pnand %p4458_p1, %p4875_p7 }
  0xf6   : > { %p4461_p11 = pneg %p4460_p3 }
  0xf8   : > { %p4466_p13 = pnand %p4464_p12, %p4461_p11 }
  0xfa   : > { %4469 = shalt.err (!%p4466_p13)
}
  0xfb   : > { %s4470_s20 = scalar_lea.vmem %s796_s1, 512  ;;  %p4478_p6 = scmp.lt.s32.totalorder %s796_s1, %s796_s1 }
  0xfc   : > { %p4471_p0 = scmp.ne.s32.totalorder %s796_s1, %s4470_s20  ;;  %p4479_p8 = scmp.lt.s32.totalorder %s4470_s20, %s4470_s20 }
  0xfe   : > { %p4473_p2 = pnand %p4471_p0, %p4875_p7  ;;  %p4480_p9 = por %p4479_p8, %p4478_p6 }
 0x100   : > { %p4474_p4 = pneg %p4473_p2 }
 0x102   : > { %p4481_p10 = pnand %p4480_p9, %p4474_p4 }
 0x104   : > { %4484 = shalt.err (!%p4481_p10)
}
 0x105   : > { %4109 = dma.hbm_to_vmem [thread:$0]  (!%p4859_p5), %s5584_s17, 512, %s796_s1, [#allocation14], %s5582_s10, %s5582_s10, %s5543_s21  }
 0x106   : > { %s4485_s25 = scalar_lea.hbm %s5525_s24, 16 }
 0x107   : > { %p4486_p1 = scmp.ne.s32.totalorder %s5525_s24, %s4485_s25  ;;  %p4492_p12 = scmp.lt.u32.totalorder %s4485_s25, %s5525_s24 }
 0x109   : > { %p4488_p3 = pnand %p4486_p1, %p4875_p7 }
 0x10b   : > { %p4489_p11 = pneg %p4488_p3 }
 0x10d   : > { %p4494_p13 = pnand %p4492_p12, %p4489_p11 }
 0x10f   : > { %4497 = shalt.err (!%p4494_p13)
}
 0x110   : > { %s4498_s22 = scalar_lea.vmem %s836_s2, 16  ;;  %s4505_s1 = scalar_lea.vmem %s836_s2, 32 }
 0x111   : > { %p4499_p0 = scmp.ne.s32.totalorder %s836_s2, %s4498_s22  ;;  %p4506_p6 = scmp.lt.s32.totalorder %s836_s2, %s836_s2 }
 0x112   : > { %p4507_p8 = scmp.lt.s32.totalorder %s4505_s1, %s4498_s22 }
 0x113   : > { %p4501_p2 = pnand %p4499_p0, %p4875_p7 }
 0x114   : > { %p4508_p9 = por %p4507_p8, %p4506_p6 }
 0x115   : > { %p4502_p4 = pneg %p4501_p2 }
 0x117   : > { %p4509_p10 = pnand %p4508_p9, %p4502_p4 }
 0x119   : > { %4512 = shalt.err (!%p4509_p10)
}
 0x11a   : > { %4115 = dma.hbm_to_vmem [thread:$0]  (!%p4859_p5), %s5525_s24, 16, %s836_s2, [#allocation17]  }
 0x11b   : > { %s59_s19 = sadd.s32 1, %s4643_s9  ;;  %s92_s6 = sadd.s32 1, %s4635_s8 }
 0x11c   : > { %p61_p7 = scmp.ge.s32.totalorder %s59_s19, 5  ;;  %p99_p1 = scmp.ne.s32.totalorder %s4635_s8, %s4631_s4 }
 0x11d   : > { %p100_p3 = scmp.eq.s32.totalorder %s4647_s5, 0  ;;  %p105_p12 = scmp.ne.s32.totalorder %s4631_s4, %s4627_s7 }
 0x11e   : > { %s5621_s19 = smov (%p61_p7, %s59_s19), 0  ;;  %p4132_p13 = scmp.lt.s32.totalorder %s4647_s5, 5 }
 0x11f   : > { %p5066_p11 = por %p100_p3, %p99_p1  ;;  %s89_s3 = ssub.s32 %s4643_s9, %s5621_s19 }
 0x120   : > { %p90_p0 = scmp.eq.s32.totalorder %s89_s3, 0  ;;  %p5586_p2 = scmp.ne.s32.totalorder %s5572_s0, 0 }
 0x121   : > { %s852_s23 = sand.u32 1, %s4635_s8   ;;  %s3713_s25 = sshll.u32 %s4643_s9, 9 }
 0x122   : > { %p5077_p4 = por %p5586_p2, %p105_p12  ;;  %s5086_s26 = sshll.u32 %s852_s23, 5 }
 0x123   : > { %s5084_s28 = scalar_select %p90_p0, %s4635_s8, %s92_s6  }
 0x124   : > { %s5588_s22 = sld [smem:[#allocation29_spill]]  ;;  %s856_s7 = scalar_lea.vmem [#allocation2], %s5086_s26 }
 0x125   : > { %s863_s20 = sshll.u32 %s856_s7, 4  ;;  %p5096_p5 = pnand %p4132_p13, %p5066_p11  ;;  %s5100_s20 = int_to_ptr.vmem [resolvable:$true] %s863_s20 }
 0x126   : > { %s5590_s30 = sld [smem:[#allocation31_spill]]  ;;  %s5107_s13 = scalar_lea.sflag [#allocation3], %s852_s23 }
 0x127   : > { %p4515_p8 = pneg %p5096_p5 }
 0x12a   : > { %s5091_s1 = scalar_lea.hbm %s5588_s22, %s3713_s25  ;;  %s4518_s15 = scalar_lea.hbm %s5588_s22, 2560 }
 0x12b   : > { %s4513_s14 = scalar_lea.hbm %s5091_s1, 512  ;;  %p4519_p7 = scmp.lt.u32.totalorder %s5091_s1, %s5588_s22 }
 0x12c   : > { %s5591_s11 = smov %s5590_s30  ;;  %s5105_s21 = scalar_lea.hbm %s5590_s30, %s3713_s25 }
 0x12d   : > { %p4514_p6 = scmp.ne.s32.totalorder %s5091_s1, %s4513_s14  ;;  %p4520_p1 = scmp.lt.u32.totalorder %s4518_s15, %s4513_s14 }
 0x12e   : > { %p4522_p11 = scmp.lt.u32.totalorder %s4513_s14, %s5091_s1 }
 0x12f   : > { %p4516_p9 = pnand %p4515_p8, %p4514_p6  ;;  %p4521_p3 = por %p4520_p1, %p4519_p7 }
 0x131   : > { %p4517_p10 = pneg %p4516_p9  ;;  %p4523_p12 = por %p4522_p11, %p4521_p3 }
 0x133   : > { %p4524_p13 = pnand %p4523_p12, %p4517_p10 }
 0x135   : > { %4527 = shalt.err (!%p4524_p13)
}
 0x136   : > { %s4528_s23 = scalar_lea.vmem %s5100_s20, 512  ;;  %s4660_s25 = smov [#allocation2]  }
 0x137   : > { %p4529_p0 = scmp.ne.s32.totalorder %s5100_s20, %s4528_s23  ;;  %s4533_s6 = sshll.u32 %s4660_s25, 4  ;;  %s4534_s6 = int_to_ptr.vmem [resolvable:$false] %s4533_s6 }
 0x138   : > { %s4535_s16 = scalar_lea.vmem %s4534_s6, 1024  ;;  %p4536_p9 = scmp.lt.s32.totalorder %s5100_s20, %s4534_s6 }
 0x139   : > { %p4531_p2 = pnand %p4529_p0, %p4515_p8  ;;  %p4537_p7 = scmp.lt.s32.totalorder %s4535_s16, %s4528_s23 }
 0x13b   : > { %p4532_p6 = pneg %p4531_p2  ;;  %p4538_p1 = por %p4537_p7, %p4536_p9 }
 0x13d   : > { %p4539_p3 = pnand %p4538_p1, %p4532_p6 }
 0x13f   : > { %4542 = shalt.err (!%p4539_p3)
}
 0x140   : > { %s5592_s14 = smov 8   ;;  %s883_s15 = scalar_lea.vmem [#allocation4], %s5086_s26 }
 0x141   : > { %4119 = dma.hbm_to_vmem [thread:$0]  (!%p5096_p5), %s5091_s1, 512, %s5100_s20, %s5107_s13, %s5582_s10, %s5582_s10, %s5592_s14  }
 0x142   : > { %s890_s17 = sshll.u32 %s883_s15, 4  ;;  %s879_s3 = sand.u32 1, %s4647_s5   ;;  %s5140_s17 = int_to_ptr.vmem [resolvable:$true] %s890_s17 }
 0x143   : > { %s5142_s30 = scalar_lea.sflag [#allocation5], %s879_s3  ;;  %s4543_s27 = scalar_lea.hbm %s5105_s21, 512 }
 0x144   : > { %p4544_p10 = scmp.ne.s32.totalorder %s5105_s21, %s4543_s27  ;;  %s4548_s25 = scalar_lea.hbm %s5591_s11, 2560 }
 0x145   : > { %p4549_p13 = scmp.lt.u32.totalorder %s5105_s21, %s5591_s11  ;;  %p4550_p0 = scmp.lt.u32.totalorder %s4548_s25, %s4543_s27 }
 0x146   : > { %p4546_p11 = pnand %p4544_p10, %p4515_p8  ;;  %p4552_p6 = scmp.lt.u32.totalorder %s4543_s27, %s5105_s21 }
 0x147   : > { %p4551_p2 = por %p4550_p0, %p4549_p13 }
 0x148   : > { %p4547_p12 = pneg %p4546_p11 }
 0x149   : > { %p4553_p9 = por %p4552_p6, %p4551_p2 }
 0x14b   : > { %p4554_p7 = pnand %p4553_p9, %p4547_p12 }
 0x14d   : > { %4557 = shalt.err (!%p4554_p7)
}
 0x14e   : > { %s4558_s13 = scalar_lea.vmem %s5140_s17, 512  ;;  %s4661_s26 = smov [#allocation4]  }
 0x14f   : > { %p4559_p1 = scmp.ne.s32.totalorder %s5140_s17, %s4558_s13  ;;  %s4563_s1 = sshll.u32 %s4661_s26, 4  ;;  %s4564_s1 = int_to_ptr.vmem [resolvable:$false] %s4563_s1 }
 0x150   : > { %s4565_s20 = scalar_lea.vmem %s4564_s1, 1024  ;;  %p4566_p11 = scmp.lt.s32.totalorder %s5140_s17, %s4564_s1 }
 0x151   : > { %p4561_p3 = pnand %p4559_p1, %p4515_p8  ;;  %p4567_p13 = scmp.lt.s32.totalorder %s4565_s20, %s4558_s13 }
 0x153   : > { %p4562_p10 = pneg %p4561_p3  ;;  %p4568_p0 = por %p4567_p13, %p4566_p11 }
 0x155   : > { %p4569_p2 = pnand %p4568_p0, %p4562_p10 }
 0x157   : > { %4572 = shalt.err (!%p4569_p2)
}
 0x158   : > { %4122 = dma.hbm_to_vmem [thread:$0]  (!%p5096_p5), %s5105_s21, 512, %s5140_s17, %s5142_s30, %s5582_s10, %s5582_s10, %s5592_s14  }
 0x159   : > { %s5593_s15 = sld [smem:[#allocation27_spill]] }
 0x15f   : > { %p5594_p8 = scmp.ne.s32.totalorder %s5593_s15, 0 }
 0x160   : > { %s910_s3 = sand.u32 (!%p5594_p8), 1, %s4631_s4  }
 0x161   : > { %908 = sbr.rel (%p5594_p8) target bundleno = 4316 (0x10dc), region = 128  ;;  %s3640_s27 = sshll.u32 (!%p5594_p8), %s910_s3, 5 }
 0x162   : > { %s911_s7 = scalar_lea.sflag (!%p5594_p8), [#allocation3], %s910_s3  ;;  %s914_s23 = scalar_lea.vmem (!%p5594_p8), [#allocation2], %s3640_s27 }
 0x168   : > { %4598 = dma.done.wait (%p5077_p4), %s911_s7, 512  }
 0x169   : > { %4600 = vsyncadd (%p5077_p4), %s911_s7, 4294966784  ;;  %s5595_s12 = sadd.s32 4294967295, %s4647_s5   ;;  %s5180_s21 = scalar_lea.vmem [#allocation4], %s3640_s27 }
 0x16a   : > { %s919_s25 = sand.u32 1, %s5595_s12  }
 0x16b   : > { %s920_s6 = scalar_lea.sflag [#allocation5], %s919_s25 }
 0x16c   : > { %4602 = dma.done.wait (%p5077_p4), %s920_s6, 512  }
 0x16d   : > { %4604 = vsyncadd (%p5077_p4), %s920_s6, 4294966784  ;;  %p5596_p5 = scmp.ne.s32.totalorder %s5572_s0, 0 }
 0x16f   : > { %4606 = dma.done.wait (%p5596_p5), [#allocation5], 512  }
 0x170   : > { %4608 = vsyncadd (%p5596_p5), [#allocation5], 4294966784 }
 0x171   : > { %4610 = dma.done.wait (%p5596_p5), [#allocation8], 528  }
 0x172   : > { %4612 = vsyncadd (%p5596_p5), [#allocation8], 4294966768 }
 0x173   : > { %4614 = dma.done.wait (%p5596_p5), [#allocation11], 528  }
 0x174   : > { %4616 = vsyncadd (%p5596_p5), [#allocation11], 4294966768 }
 0x175   : > { %4618 = dma.done.wait (%p5596_p5), [#allocation14], 528  }
 0x176   : > { %4620 = vsyncadd (%p5596_p5), [#allocation14], 4294966768 }
 0x177   : > { %4622 = dma.done.wait (%p5596_p5), [#allocation17], 32  }
 0x178   : > { %4624 = vsyncadd (%p5596_p5), [#allocation17], 4294967264  ;;  %s5597_s10 = sld [smem:[#allocation26_spill]]  ;;  %vm1085_vm0 = vcmask 261120   ;;  %v1074_v0 = vld [vmem:[%s914_s23] sm:$0xff]  ;;  %v1075_v1 = vld [vmem:[%s914_s23 + $0x8] sm:$0xff] }
 0x179   : > { %v1076_v2 = vld [vmem:[%s914_s23 + $0x10] sm:$0xff]  ;;  %v3976_v3 = vpack.c.bf16 %v1075_v1, %v1074_v0  ;;  %v1077_v4 = vld [vmem:[%s914_s23 + $0x18] sm:$0xff]  ;;  %s5598_s17 = sld [smem:[#allocation28_spill]]  ;;  %s5599_s26 = sld [smem:[#allocation30_spill]]  ;;  %v1214_v27 = vld [vmem:[#allocation6] sm:$0xff]  ;;  %v4662_v61 = vmov 0.0  }
 0x17a   : > { %v3980_v6 = vpack.c.bf16 %v1077_v4, %v1076_v2  ;;  %v1215_v28 = vld [vmem:[#allocation6 + $0x8] sm:$0xff]  ;;  %v1216_v33 = vld [vmem:[#allocation6 + $0x10] sm:$0xff]  ;;  %v1217_v34 = vld [vmem:[#allocation6 + $0x18] sm:$0xff]  ;;  %s5600_s3 = sld [smem:[#allocation33_spill]]  ;;  %s5601_s23 = sld [smem:[#allocation34_spill]]  ;;  %vm4663_vm1 = vmmov 0  }
 0x17b   : > { %3977 = vmatprep.subr.bf16.mxu0 %v3976_v3  ;;  %v3984_v29 = vpack.c.bf16 %v1215_v28, %v1214_v27  ;;  %v1306_v30 = vld [vmem:[#allocation9] sm:$0xff]  ;;  %v1307_v31 = vld [vmem:[#allocation9 + $0x8] sm:$0xff]  ;;  %v3988_v35 = vpack.c.bf16 %v1217_v34, %v1216_v33  ;;  %v1308_v36 = vld [vmem:[#allocation9 + $0x10] sm:$0xff]  ;;  %vm1479_vm2 = vcmask 64512   ;;  %s4664_s12 = smov 112   ;;  %s4665_s25 = smov 120  }
 0x17c   : > { %3979 = vmatpush3.bf16.msra.mxu0 %v3976_v3  ;;  %v3992_v32 = vpack.c.bf16 %v1307_v31, %v1306_v30  ;;  %v1309_v37 = vld [vmem:[#allocation9 + $0x18] sm:$0xff]  ;;  %v1392_v39 = vld [vmem:[#allocation12] sm:$0xff]  ;;  %v1393_v40 = vld [vmem:[#allocation12 + $0x8] sm:$0xff]  ;;  %s4666_s6 = smov 104   ;;  %s4667_s2 = smov 8   ;;  %vm2149_vm3 = vcmask 130048  }
 0x17d   : > { %3981 = vmatprep.subr.bf16.mxu0 %v3980_v6  ;;  %3985 = vmatprep.subr.bf16.mxu1 %v3984_v29  ;;  %v3996_v38 = vpack.c.bf16 %v1309_v37, %v1308_v36  ;;  %v4000_v41 = vpack.c.bf16 %v1393_v40, %v1392_v39  ;;  %v1394_v56 = vld [vmem:[#allocation12 + $0x10] sm:$0xff]  ;;  %v1395_v57 = vld [vmem:[#allocation12 + $0x18] sm:$0xff]  ;;  %s4668_s14 = smov 16   ;;  %s4669_s0 = smov 24   ;;  %vm2151_vm4 = vcmask 195584   ;;  %vm3072_vm5 = vcmask 523264  }
 0x17e   : > { %p1056_p4 = scmp.lt.s32.totalorder %s5597_s10, 4  ;;  %3987 = vmatpush3.bf16.msra.mxu1 %v3984_v29  ;;  %v4004_v60 = vpack.c.bf16 %v1395_v57, %v1394_v56  ;;  %v3658_v62 = vld [vmem:[#allocation7] ss:$0 sm:$0xff]  ;;  %v3661_v63 = vld [vmem:[#allocation10] ss:$0 sm:$0xff]  ;;  %s5602_s13 = sld [smem:[#allocation50_spill]] }
 0x17f   : > { %v1072_v5 = vld [vmem:[%s5598_s17] sm:$0xff]  ;;  %v1073_v7 = vld [vmem:[%s5598_s17 + $0x8] sm:$0xff]  ;;  %3989 = vmatprep.subr.bf16.mxu1 %v3988_v35  ;;  %s5604_s27 = sld [smem:[#allocation46_spill]]  ;;  %s5607_s15 = sld [smem:[#allocation48_spill]] }
 0x180   : > { %3808 = vmatprep.mubr.msk.f32.mxu0 %vm1085_vm0, %v1072_v5  ;;  %3983 = vmatpush3.bf16.msra.mxu0 %v3980_v6  ;;  %s5623_s10 = smov (!%p1056_p4, %s5597_s10), 4  ;;  %v3656_v49 = vld [vmem:[%s5600_s3] ss:$0 sm:$0xff]  ;;  %s5608_s7 = sld [smem:[#allocation49_spill]] }
 0x181   : > { %s1058_s1 = scalar_lea.vmem %s5599_s26, %s5623_s10  ;;  %3993 = vmatprep.subr.bf16.mxu0 %v3992_v32  ;;  %v3657_v51 = vld [vmem:[%s5601_s23] ss:$0 sm:$0xff]  ;;  %s5606_s26 = sld [smem:[#allocation52_spill]] }
 0x182   : > { %v3653_v8 = vld [vmem:[%s1058_s1] ss:$0 sm:$0xff]  ;;  %3991 = vmatpush3.bf16.msra.mxu1 %v3988_v35  ;;  %s5611_s16 = sld [smem:[#allocation32_spill]]  ;;  %s3715_s3 = sshll.u32 %s5623_s10, 4 }
 0x183   : > { %3809 = vmatmul.mubr.msk.f32.vlgmr.msra.gmra.mrb[0].mxu0 %vm1085_vm0, %v1073_v7  ;;  %4001 = vmatprep.subr.bf16.mxu1 %v4000_v41  ;;  %s5613_s23 = sld [smem:[#allocation38_spill]] }
 0x184   : > { %3995 = vmatpush3.bf16.msra.mxu0 %v3992_v32 }
 0x185   : > { %3997 = vmatprep.subr.bf16.mxu0 %v3996_v38 }
 0x188   : > { %3999 = vmatpush3.bf16.msra.mxu0 %v3996_v38 }
 0x189   : > { %3854 = vmatprep.subr.mxu0 %v4662_v61 }
 0x256   : > { %v3810_v9 = vpop.f32.mrb[0].mxu0 }
 0x257   : > { %v1158_v10 = vpop.f32.mrb[1].mxu0  ;;  %v1164_v11 = vadd.f32 %v3810_v9, %v3653_v8 }
 0x258   : > { %v1159_v12 = vadd.f32 %v3653_v8, %v1158_v10 }
 0x259   : > { %v1168_v15 = vadd.f32 %v1164_v11, %v1073_v7  ;;  %v3664_v7 = vld [vmem:[#allocation13] ss:$0 sm:$0xff] }
 0x25a   : > { %v1167_v13 = vadd.f32 %v1159_v12, %v1072_v5 }
 0x25b   : > { %v1174_v16 = vsel %vm1085_vm0, %v1168_v15, 0.0 }
 0x25c   : > { %v1171_v14 = vsel %vm1085_vm0, %v1167_v13, 0.0 }
 0x25d   : > { %1172 = vadd.xlane.f32.xlu0 %v1171_v14 }
 0x261   : > { %1175 = vadd.xlane.f32.xlu0 %v1174_v16 }
 0x2ea   : > { %v1173_v17 = vpop.xlane.xlu0 %1172 }
 0x2eb   : > { %v1178_v18 = vmul.f32 0.03125, %v1173_v17 }
 0x2ed   : > { %v1180_v19 = vsub.f32 %v1167_v13, %v1178_v18 }
 0x2ee   : > { %v1176_v20 = vpop.xlane.xlu0 %1175 }
 0x2ef   : > { %v1179_v21 = vmul.f32 0.03125, %v1176_v20  ;;  %v1182_v22 = vmul.f32 %v1180_v19, %v1180_v19 }
 0x2f1   : > { %v1181_v23 = vsub.f32 %v1168_v15, %v1179_v21  ;;  %v1184_v24 = vsel %vm1085_vm0, %v1182_v22, 0.0 }
 0x2f2   : > { %1185 = vadd.xlane.f32.xlu1 %v1184_v24 }
 0x2f3   : > { %v1183_v25 = vmul.f32 %v1181_v23, %v1181_v23 }
 0x2f5   : > { %v1187_v26 = vsel %vm1085_vm0, %v1183_v25, 0.0 }
 0x2f6   : > { %1188 = vadd.xlane.f32.xlu1 %v1187_v26 }
 0x37f   : > { %v1186_v42 = vpop.xlane.xlu1 %1185 }
 0x380   : > { %v1190_v43 = vmul.f32 0.03125, %v1186_v42 }
 0x382   : > { %v1192_v44 = vadd.f32 1e-05, %v1190_v43 }
 0x383   : > { %v1189_v45 = vpop.xlane.xlu1 %1188 }
 0x384   : > { %4209 = vrsqrt.f32 %v1192_v44  ;;  %v1191_v46 = vmul.f32 0.03125, %v1189_v45 }
 0x386   : > { %v1193_v47 = vadd.f32 1e-05, %v1191_v46 }
 0x388   : > { %4211 = vrsqrt.f32 %v1193_v47 }
 0x38e   : > { %v4210_v48 = vpop.eup %4209 }
 0x38f   : > { %v1196_v50 = vmul.f32 %v4210_v48, %v1180_v19 }
 0x391   : > { %v1204_v52 = vmul.f32 %v3656_v49, %v1196_v50 }
 0x392   : > { %v4212_v53 = vpop.eup %4211 }
 0x393   : > { %v1197_v54 = vmul.f32 %v4212_v53, %v1181_v23  ;;  %v5232_v55 = vadd.f32 %v3657_v51, %v1204_v52 }
 0x395   : > { %3819 = vmatprep.mubr.msk.f32.mxu1 %vm1085_vm0, %v5232_v55  ;;  %3830 = vmatprep.mubr.msk.f32.mxu0 %vm1085_vm0, %v5232_v55  ;;  %v1205_v58 = vmul.f32 %v3656_v49, %v1197_v54 }
 0x397   : > { %v5238_v59 = vadd.f32 %v3657_v51, %v1205_v58 }
 0x399   : > { %3820 = vmatmul.mubr.msk.f32.vlgmr.msra.gmra.mrb[0].mxu1 %vm1085_vm0, %v5238_v59  ;;  %3831 = vmatmul.mubr.msk.f32.vlgmr.msra.gmra.mrb[2].mxu0 %vm1085_vm0, %v5238_v59 }
 0x39a   : > { %4003 = vmatpush3.bf16.msra.mxu1 %v4000_v41  ;;  %3841 = vmatprep.mubr.msk.f32.mxu1 %vm1085_vm0, %v5232_v55 }
 0x39b   : > { %4005 = vmatprep.subr.bf16.mxu1 %v4004_v60  ;;  %3856 = vmatprep.mubr.msk.f32.mxu0 %vm4663_vm1, %v4662_v61 }
 0x39e   : > { %4007 = vmatpush3.bf16.msra.mxu1 %v4004_v60 }
 0x39f   : > { %3844 = vmatprep.subr.mxu1 %v4662_v61 }
 0x3a1   : > { %3842 = vmatmul.mubr.msk.f32.vlgmr.msra.gmra.mrb[2].mxu1 %vm1085_vm0, %v5238_v59 }
 0x3a2   : > { %3846 = vmatprep.mubr.msk.f32.mxu1 %vm4663_vm1, %v4662_v61 }
 0x46c   : > { %v3821_v0 = vpop.f32.mrb[0].mxu1  ;;  %v3832_v1 = vpop.f32.mrb[2].mxu0 }
 0x46d   : > { %v1297_v2 = vpop.f32.mrb[1].mxu1  ;;  %v1383_v3 = vpop.f32.mrb[3].mxu0  ;;  %v1389_v11 = vadd.f32 %v3832_v1, %v3661_v63  ;;  %v1303_v13 = vadd.f32 %v3821_v0, %v3658_v62 }
 0x46e   : > { %v1298_v4 = vadd.f32 %v3658_v62, %v1297_v2  ;;  %v1384_v5 = vadd.f32 %v3661_v63, %v1383_v3 }
 0x46f   : > { %v2153_v14 = vmul.f32 0.35355338, %v1303_v13 }
 0x470   : > { %v1478_v6 = vmul.f32 0.35355338, %v1298_v4  ;;  %1808 = vrot.lane.b32.xlu1 %v1384_v5, %s4664_s12  ;;  %1642 = vrot.lane.b32.xlu0 %v1384_v5, %s4665_s25 }
 0x471   : > { %3845 = vmatpush3.xpose.msk.msra.mxu1 %vm1479_vm2, %v1384_v5 }
 0x472   : > { %3849 = vmatprep.subr.mxu1 %v4662_v61 }
 0x474   : > { %v3843_v8 = vpop.f32.mrb[2].mxu1  ;;  %3847 = vmatmul.mubr.msk.f32.vlgmr.msra.gmra.mrb[4].mxu1 %vm1479_vm2, %v1478_v6  ;;  %1973 = vrot.lane.b32.xlu0 %v1384_v5, %s4666_s6 }
 0x475   : > { %v5260_v9 = vadd.f32 %v3843_v8, %v3664_v7  ;;  %v1469_v10 = vpop.f32.mrb[3].mxu1  ;;  %1640 = vrot.lane.b32.xlu1 %v1478_v6, %s4665_s25  ;;  %3851 = vmatprep.mubr.msk.f32.mxu1 %vm4663_vm1, %v4662_v61 }
 0x476   : > { %v5265_v12 = vadd.f32 %v3664_v7, %v1469_v10 }
 0x478   : > { %3850 = vmatpush3.msra.mxu1 %v5265_v12  ;;  %2316 = vrot.lane.b32.xlu0 %v1389_v11, %s4665_s25 }
 0x479   : > { %1806 = vrot.lane.b32.xlu1 %v1478_v6, %s4664_s12  ;;  %3859 = vmatprep.subr.mxu1 %v4662_v61 }
 0x47c   : > { %2482 = vrot.lane.b32.xlu0 %v1389_v11, %s4664_s12 }
 0x47d   : > { %1971 = vrot.lane.b32.xlu1 %v1478_v6, %s4666_s6 }
 0x480   : > { %2647 = vrot.lane.b32.xlu0 %v1389_v11, %s4666_s6 }
 0x481   : > { %2314 = vrot.lane.b32.xlu1 %v2153_v14, %s4665_s25 }
 0x485   : > { %2480 = vrot.lane.b32.xlu1 %v2153_v14, %s4664_s12 }
 0x489   : > { %2645 = vrot.lane.b32.xlu1 %v2153_v14, %s4666_s6 }
 0x4e2   : > { %v1809_v15 = vpop.permute.xlu1 %1808  ;;  %v1643_v16 = vpop.permute.xlu0 %1642 }
 0x4e3   : > { %3855 = vmatpush3.xpose.msk.msra.mxu0 %vm1479_vm2, %v1643_v16 }
 0x4e4   : > { %3864 = vmatprep.subr.mxu0 %v4662_v61 }
 0x4e6   : > { %v1974_v18 = vpop.permute.xlu0 %1973 }
 0x4e7   : > { %v1641_v17 = vpop.permute.xlu1 %1640 }
 0x4e8   : > { %3857 = vmatmul.mubr.msk.f32.vlgmr.msra.gmra.mrb[4].mxu0 %vm1479_vm2, %v1641_v17 }
 0x4e9   : > { %3865 = vmatpush3.xpose.msk.msra.mxu0 %vm1479_vm2, %v1809_v15  ;;  %3866 = vmatprep.mubr.msk.f32.mxu0 %vm4663_vm1, %v4662_v61 }
 0x4ea   : > { %3874 = vmatprep.subr.mxu0 %v4662_v61  ;;  %v2317_v21 = vpop.permute.xlu0 %2316 }
 0x4eb   : > { %v1807_v19 = vpop.permute.xlu1 %1806 }
 0x4ec   : > { %3867 = vmatmul.mubr.msk.f32.vlgmr.msra.gmra.mrb[6].mxu0 %vm1479_vm2, %v1807_v19 }
 0x4ed   : > { %3875 = vmatpush3.xpose.msk.msra.mxu0 %vm1479_vm2, %v1974_v18  ;;  %3876 = vmatprep.mubr.msk.f32.mxu0 %vm4663_vm1, %v4662_v61 }
 0x4ee   : > { %3884 = vmatprep.subr.mxu0 %v4662_v61  ;;  %v2483_v23 = vpop.permute.xlu0 %2482 }
 0x4ef   : > { %v1972_v20 = vpop.permute.xlu1 %1971 }
 0x4f0   : > { %3877 = vmatmul.mubr.msk.f32.vlgmr.msra.gmra.mrb[8].mxu0 %vm1479_vm2, %v1972_v20 }
 0x4f1   : > { %3885 = vmatpush3.xpose.msk.msra.mxu0 %vm1479_vm2, %v1389_v11  ;;  %3886 = vmatprep.mubr.msk.f32.mxu0 %vm4663_vm1, %v4662_v61 }
 0x4f2   : > { %3894 = vmatprep.subr.mxu0 %v4662_v61  ;;  %v2648_v25 = vpop.permute.xlu0 %2647 }
 0x4f3   : > { %v2315_v22 = vpop.permute.xlu1 %2314 }
 0x4f4   : > { %3887 = vmatmul.mubr.msk.f32.vlgmr.msra.gmra.mrb[10].mxu0 %vm1479_vm2, %v2153_v14 }
 0x4f5   : > { %3895 = vmatpush3.xpose.msk.msra.mxu0 %vm1479_vm2, %v2317_v21  ;;  %3896 = vmatprep.mubr.msk.f32.mxu0 %vm4663_vm1, %v4662_v61 }
 0x4f6   : > { %3904 = vmatprep.subr.mxu0 %v4662_v61 }
 0x4f7   : > { %v2481_v24 = vpop.permute.xlu1 %2480 }
 0x4f8   : > { %3897 = vmatmul.mubr.msk.f32.vlgmr.msra.gmra.mrb[12].mxu0 %vm1479_vm2, %v2315_v22 }
 0x4f9   : > { %3905 = vmatpush3.xpose.msk.msra.mxu0 %vm1479_vm2, %v2483_v23  ;;  %3906 = vmatprep.mubr.msk.f32.mxu0 %vm4663_vm1, %v4662_v61 }
 0x4fa   : > { %3914 = vmatprep.subr.mxu0 %v4662_v61 }
 0x4fb   : > { %v2646_v26 = vpop.permute.xlu1 %2645 }
 0x4fc   : > { %3907 = vmatmul.mubr.msk.f32.vlgmr.msra.gmra.mrb[14].mxu0 %vm1479_vm2, %v2481_v24 }
 0x4fd   : > { %3915 = vmatpush3.xpose.msk.msra.mxu0 %vm1479_vm2, %v2648_v25  ;;  %3916 = vmatprep.mubr.msk.f32.mxu0 %vm4663_vm1, %v4662_v61 }
 0x500   : > { %3917 = vmatmul.mubr.msk.f32.vlgmr.msra.gmra.mrb[16].mxu0 %vm1479_vm2, %v2646_v26 }
 0x547   : > { %v1552_v27 = vpop.f32.mrb[4].mxu1 }
 0x548   : > { %v3848_v28 = vpop.f32.mrb[5].mxu1  ;;  %v1556_v29 = vsel %vm1479_vm2, %v1552_v27, -inf }
 0x549   : > { %1557 = vmax.xlane.f32.xlu0 %v1556_v29 }
 0x5bb   : > { %v1714_v30 = vpop.f32.mrb[4].mxu0 }
 0x5bc   : > { %v3858_v31 = vpop.f32.mrb[5].mxu0  ;;  %v1718_v32 = vsel %vm1479_vm2, %v1714_v30, -inf }
 0x5bd   : > { %1719 = vmax.xlane.f32.xlu1 %v1718_v32 }
 0x5bf   : > { %v1880_v33 = vpop.f32.mrb[6].mxu0 }
 0x5c0   : > { %v3868_v34 = vpop.f32.mrb[7].mxu0  ;;  %v1884_v35 = vsel %vm1479_vm2, %v1880_v33, -inf }
 0x5c1   : > { %1885 = vmax.xlane.f32.xlu0 %v1884_v35 }
 0x5c3   : > { %v2045_v36 = vpop.f32.mrb[8].mxu0 }
 0x5c4   : > { %v3878_v37 = vpop.f32.mrb[9].mxu0  ;;  %v2049_v38 = vsel %vm1479_vm2, %v2045_v36, -inf }
 0x5c5   : > { %2050 = vmax.xlane.f32.xlu0 %v2049_v38 }
 0x5c7   : > { %v2226_v39 = vpop.f32.mrb[10].mxu0 }
 0x5c8   : > { %v3888_v40 = vpop.f32.mrb[11].mxu0  ;;  %v2230_v41 = vsel %vm1479_vm2, %v2226_v39, -inf }
 0x5c9   : > { %2231 = vmax.xlane.f32.xlu0 %v2230_v41 }
 0x5cb   : > { %v2388_v42 = vpop.f32.mrb[12].mxu0 }
 0x5cc   : > { %v3898_v43 = vpop.f32.mrb[13].mxu0  ;;  %v2392_v44 = vsel %vm1479_vm2, %v2388_v42, -inf }
 0x5cd   : > { %2393 = vmax.xlane.f32.xlu1 %v2392_v44 }
 0x5cf   : > { %v2554_v45 = vpop.f32.mrb[14].mxu0 }
 0x5d0   : > { %v3908_v46 = vpop.f32.mrb[15].mxu0  ;;  %v2558_v47 = vsel %vm1479_vm2, %v2554_v45, -inf }
 0x5d1   : > { %2559 = vmax.xlane.f32.xlu0 %v2558_v47 }
 0x5d3   : > { %v2719_v48 = vpop.f32.mrb[16].mxu0 }
 0x5d4   : > { %v3918_v49 = vpop.f32.mrb[17].mxu0  ;;  %v2723_v50 = vsel %vm1479_vm2, %v2719_v48, -inf }
 0x5d5   : > { %2724 = vmax.xlane.f32.xlu1 %v2723_v50 }
 0x5d6   : > { %v1558_v51 = vpop.xlane.xlu0 %1557 }
 0x5d7   : > { %v1559_v52 = vsub.f32 %v1552_v27, %v1558_v51 }
 0x5d9   : > { %v1560_v53 = vmul.f32 1.442695, %v1559_v52 }
 0x5db   : > { %4213 = vpow2.f32 %v1560_v53 }
 0x5e5   : > { %v4214_v54 = vpop.eup %4213 }
 0x5e6   : > { %v1562_v56 = vsel %vm1479_vm2, %v4214_v54, 0.0 }
 0x5e7   : > { %1563 = vadd.xlane.f32.xlu0 %v1562_v56 }
 0x64a   : > { %v1720_v57 = vpop.xlane.xlu1 %1719 }
 0x64b   : > { %v1721_v58 = vsub.f32 %v1714_v30, %v1720_v57 }
 0x64d   : > { %v1722_v60 = vmul.f32 1.442695, %v1721_v58 }
 0x64e   : > { %v1886_v62 = vpop.xlane.xlu0 %1885 }
 0x64f   : > { %4215 = vpow2.f32 %v1722_v60  ;;  %v1887_v63 = vsub.f32 %v1880_v33, %v1886_v62 }
 0x651   : > { %v1888_v0 = vmul.f32 1.442695, %v1887_v63 }
 0x652   : > { %v2051_v5 = vpop.xlane.xlu0 %2050 }
 0x653   : > { %4217 = vpow2.f32 %v1888_v0  ;;  %v2052_v14 = vsub.f32 %v2045_v36, %v2051_v5  ;;  %v2825_v5 = vld [vmem:[#allocation15] sm:$0xff] }
 0x655   : > { %v2053_v18 = vmul.f32 1.442695, %v2052_v14 }
 0x656   : > { %v2232_v6 = vpop.xlane.xlu0 %2231 }
 0x657   : > { %v2233_v10 = vsub.f32 %v2226_v39, %v2232_v6  ;;  %v2826_v6 = vld [vmem:[#allocation15 + $0x8] sm:$0xff] }
 0x659   : > { %v4216_v1 = vpop.eup %4215  ;;  %v2234_v15 = vmul.f32 1.442695, %v2233_v10 }
 0x65a   : > { %v1724_v2 = vsel %vm1479_vm2, %v4216_v1, 0.0  ;;  %v2394_v17 = vpop.xlane.xlu1 %2393 }
 0x65b   : > { %1725 = vadd.xlane.f32.xlu1 %v1724_v2  ;;  %v2395_v19 = vsub.f32 %v2388_v42, %v2394_v17 }
 0x65d   : > { %v5319_v3 = vpop.eup %4217  ;;  %v2396_v22 = vmul.f32 1.442695, %v2395_v19 }
 0x65e   : > { %v1890_v4 = vsel %vm1479_vm2, %v5319_v3, 0.0  ;;  %v2560_v7 = vpop.xlane.xlu0 %2559 }
 0x65f   : > { %1891 = vadd.xlane.f32.xlu0 %v1890_v4  ;;  %v2561_v16 = vsub.f32 %v2554_v45, %v2560_v7  ;;  %v4008_v7 = vpack.c.bf16 %v2826_v6, %v2825_v5 }
 0x661   : > { %v2562_v20 = vmul.f32 1.442695, %v2561_v16  ;;  %4009 = vmatprep.subr.bf16.mxu0 %v4008_v7 }
 0x662   : > { %v2725_v21 = vpop.xlane.xlu1 %2724  ;;  %4011 = vmatpush3.bf16.msra.mxu0 %v4008_v7 }
 0x66c   : > { %1895 = vrot.lane.b32.xlu1 %v5265_v12, %s4664_s12 }
 0x670   : > { %2060 = vrot.lane.b32.xlu1 %v5265_v12, %s4666_s6 }
 0x674   : > { %2404 = vrot.lane.b32.xlu1 %v5260_v9, %s4665_s25  ;;  %v1564_v8 = vpop.xlane.xlu0 %1563 }
 0x675   : > { %4219 = vrcp.f32 %v1564_v8  ;;  %1730 = vrot.lane.b32.xlu0 %v5265_v12, %s4665_s25  ;;  %v2726_v12 = vsub.f32 %v2719_v48, %v2725_v21  ;;  %v2828_v8 = vld [vmem:[#allocation15 + $0x18] sm:$0xff]  ;;  %s5605_s25 = sld [smem:[#allocation47_spill]] }
 0x676   : > { %4221 = vpow2.f32 %v2234_v15 }
 0x677   : > { %4223 = vpow2.f32 %v2053_v18  ;;  %v2727_v23 = vmul.f32 1.442695, %v2726_v12 }
 0x678   : > { %4225 = vpow2.f32 %v2562_v20 }
 0x679   : > { %4227 = vpow2.f32 %v2396_v22 }
 0x67a   : > { %4229 = vpow2.f32 %v2727_v23 }
 0x67f   : > { %v4220_v11 = vpop.eup %4219 }
 0x680   : > { %v1566_v13 = vmul.f32 %v4220_v11, %v4214_v54  ;;  %v4222_v24 = vpop.eup %4221 }
 0x681   : > { %v4224_v25 = vpop.eup %4223  ;;  %v2236_v26 = vsel %vm1479_vm2, %v4222_v24, 0.0 }
 0x682   : > { %3852 = vmatmul.mubr.msk.f32.vlgmr.msra.gmra.mrb[6].mxu1 %vm1479_vm2, %v1566_v13  ;;  %v5335_v27 = vpop.eup %4225  ;;  %v2055_v28 = vsel %vm1479_vm2, %v4224_v25, 0.0 }
 0x683   : > { %3861 = vmatprep.mubr.msk.f32.mxu1 %vm4663_vm1, %v4662_v61  ;;  %v2564_v29 = vsel %vm1479_vm2, %v5335_v27, 0.0  ;;  %v4228_v30 = vpop.eup %4227 }
 0x684   : > { %v2398_v31 = vsel %vm1479_vm2, %v4228_v30, 0.0  ;;  %v5341_v32 = vpop.eup %4229 }
 0x685   : > { %v2729_v33 = vsel %vm1479_vm2, %v5341_v32, 0.0 }
 0x694   : > { %2237 = vadd.xlane.f32.xlu0 %v2236_v26 }
 0x698   : > { %2056 = vadd.xlane.f32.xlu1 %v2055_v28  ;;  %2565 = vadd.xlane.f32.xlu0 %v2564_v29 }
 0x69c   : > { %2399 = vadd.xlane.f32.xlu1 %v2398_v31 }
 0x6a0   : > { %2730 = vadd.xlane.f32.xlu1 %v2729_v33  ;;  %v3691_v33 = vld [vmem:[#allocation16] ss:$0 sm:$0xff] }
 0x6ae   : > { %2569 = vrot.lane.b32.xlu0 %v5260_v9, %s4664_s12  ;;  %s5603_s12 = sld [smem:[#allocation51_spill]] }
 0x6b1   : > { %2734 = vrot.lane.b32.xlu1 %v5260_v9, %s4666_s6  ;;  %s5609_s6 = sld [smem:[#allocation35_spill]] }
 0x6e8   : > { %v1726_v34 = vpop.xlane.xlu1 %1725 }
 0x6e9   : > { %4231 = vrcp.f32 %v1726_v34 }
 0x6ec   : > { %v1892_v35 = vpop.xlane.xlu0 %1891  ;;  %v1896_v39 = vpop.permute.xlu1 %1895 }
 0x6ed   : > { %4233 = vrcp.f32 %v1892_v35 }
 0x6f0   : > { %v1731_v36 = vpop.permute.xlu0 %1730  ;;  %v2061_v42 = vpop.permute.xlu1 %2060 }
 0x6f1   : > { %3860 = vmatpush3.msra.mxu1 %v1731_v36 }
 0x6f2   : > { %3869 = vmatprep.subr.mxu1 %v4662_v61 }
 0x6f3   : > { %v4232_v37 = vpop.eup %4231 }
 0x6f4   : > { %v1728_v38 = vmul.f32 %v4232_v37, %v4216_v1  ;;  %v2405_v43 = vpop.permute.xlu1 %2404 }
 0x6f6   : > { %3862 = vmatmul.mubr.msk.f32.vlgmr.msra.gmra.mrb[8].mxu1 %vm1479_vm2, %v1728_v38 }
 0x6f7   : > { %v4234_v40 = vpop.eup %4233  ;;  %3870 = vmatpush3.msra.mxu1 %v1896_v39  ;;  %3871 = vmatprep.mubr.msk.f32.mxu1 %vm4663_vm1, %v4662_v61 }
 0x6f8   : > { %v1894_v41 = vmul.f32 %v4234_v40, %v5319_v3  ;;  %3879 = vmatprep.subr.mxu1 %v4662_v61 }
 0x6fa   : > { %3872 = vmatmul.mubr.msk.f32.vlgmr.msra.gmra.mrb[10].mxu1 %vm1479_vm2, %v1894_v41 }
 0x6fb   : > { %3880 = vmatpush3.msra.mxu1 %v2061_v42  ;;  %3881 = vmatprep.mubr.msk.f32.mxu1 %vm4663_vm1, %v4662_v61 }
 0x6fc   : > { %3889 = vmatprep.subr.mxu1 %v4662_v61 }
 0x721   : > { %v2238_v44 = vpop.xlane.xlu0 %2237 }
 0x725   : > { %v2057_v45 = vpop.xlane.xlu1 %2056  ;;  %v2566_v47 = vpop.xlane.xlu0 %2565 }
 0x726   : > { %4235 = vrcp.f32 %v2057_v45 }
 0x727   : > { %4237 = vrcp.f32 %v2238_v44 }
 0x729   : > { %v2400_v46 = vpop.xlane.xlu1 %2399  ;;  %v2570_v57 = vpop.permute.xlu0 %2569 }
 0x72a   : > { %4239 = vrcp.f32 %v2400_v46 }
 0x72b   : > { %4241 = vrcp.f32 %v2566_v47 }
 0x72d   : > { %v2731_v50 = vpop.xlane.xlu1 %2730 }
 0x72e   : > { %4243 = vrcp.f32 %v2731_v50 }
 0x730   : > { %v4236_v48 = vpop.eup %4235 }
 0x731   : > { %v2059_v49 = vmul.f32 %v4236_v48, %v4224_v25  ;;  %v4238_v51 = vpop.eup %4237  ;;  %v2735_v60 = vpop.permute.xlu1 %2734 }
 0x732   : > { %v2240_v52 = vmul.f32 %v4238_v51, %v4222_v24 }
 0x733   : > { %3882 = vmatmul.mubr.msk.f32.vlgmr.msra.gmra.mrb[12].mxu1 %vm1479_vm2, %v2059_v49 }
 0x734   : > { %3890 = vmatpush3.msra.mxu1 %v5260_v9  ;;  %3891 = vmatprep.mubr.msk.f32.mxu1 %vm4663_vm1, %v4662_v61  ;;  %v4240_v53 = vpop.eup %4239 }
 0x735   : > { %3899 = vmatprep.subr.mxu1 %v4662_v61  ;;  %v2402_v54 = vmul.f32 %v4240_v53, %v4228_v30  ;;  %v4242_v56 = vpop.eup %4241  ;;  %v2964_v53 = vld [vmem:[%s5602_s13 + $0x8] sm:$0xff] }
 0x736   : > { %v2568_v9 = vmul.f32 %v4242_v56, %v5335_v27  ;;  %v2965_v56 = vld [vmem:[%s5602_s13 + $0x10] sm:$0xff] }
 0x737   : > { %3892 = vmatmul.mubr.msk.f32.vlgmr.msra.gmra.mrb[14].mxu1 %vm1479_vm2, %v2240_v52  ;;  %v2963_v52 = vld [vmem:[%s5602_s13] sm:$0xff] }
 0x738   : > { %3900 = vmatpush3.msra.mxu1 %v2405_v43  ;;  %3901 = vmatprep.mubr.msk.f32.mxu1 %vm4663_vm1, %v4662_v61  ;;  %v4244_v58 = vpop.eup %4243 }
 0x739   : > { %3909 = vmatprep.subr.mxu1 %v4662_v61  ;;  %v2733_v62 = vmul.f32 %v4244_v58, %v5341_v32  ;;  %v3057_v58 = vld [vmem:[%s5603_s12] sm:$0xff] }
 0x73b   : > { %3902 = vmatmul.mubr.msk.f32.vlgmr.msra.gmra.mrb[16].mxu1 %vm1479_vm2, %v2402_v54  ;;  %v4016_v54 = vpack.c.bf16 %v2964_v53, %v2963_v52 }
 0x73c   : > { %3910 = vmatpush3.msra.mxu1 %v2570_v57  ;;  %3911 = vmatprep.mubr.msk.f32.mxu1 %vm4663_vm1, %v4662_v61  ;;  %v2966_v57 = vld [vmem:[%s5602_s13 + $0x18] sm:$0xff] }
 0x73d   : > { %3919 = vmatprep.subr.mxu1 %v4662_v61 }
 0x73f   : > { %3912 = vmatmul.mubr.msk.f32.vlgmr.msra.gmra.mrb[18].mxu1 %vm1479_vm2, %v2568_v9  ;;  %v4020_v9 = vpack.c.bf16 %v2966_v57, %v2965_v56 }
 0x740   : > { %3920 = vmatpush3.msra.mxu1 %v2735_v60  ;;  %3921 = vmatprep.mubr.msk.f32.mxu1 %vm4663_vm1, %v4662_v61  ;;  %v2827_v61 = vld [vmem:[#allocation15 + $0x10] sm:$0xff]  ;;  %v3058_v60 = vld [vmem:[%s5603_s12 + $0x8] sm:$0xff] }
 0x741   : > { %v4012_v11 = vpack.c.bf16 %v2828_v8, %v2827_v61  ;;  %4017 = vmatprep.subr.bf16.mxu1 %v4016_v54 }
 0x743   : > { %3922 = vmatmul.mubr.msk.f32.vlgmr.msra.gmra.mrb[20].mxu1 %vm1479_vm2, %v2733_v62  ;;  %4013 = vmatprep.subr.bf16.mxu0 %v4012_v11  ;;  %v3059_v62 = vld [vmem:[%s5603_s12 + $0x10] sm:$0xff] }
 0x744   : > { %4015 = vmatpush3.bf16.msra.mxu0 %v4012_v11  ;;  %4019 = vmatpush3.bf16.msra.mxu1 %v4016_v54 }
 0x745   : > { %4021 = vmatprep.subr.bf16.mxu1 %v4020_v9 }
 0x748   : > { %4023 = vmatpush3.bf16.msra.mxu1 %v4020_v9  ;;  %v3702_v9 = vld [vmem:[%s5607_s15] ss:$0 sm:$0xff]  ;;  %s5612_s15 = sld [smem:[#allocation37_spill]] }
 0x755   : > { %v1636_v63 = vpop.f32.mrb[6].mxu1 }
 0x756   : > { %v3853_v0 = vpop.f32.mrb[7].mxu1 }
 0x757   : > { %v3060_v0 = vld [vmem:[%s5603_s12 + $0x18] sm:$0xff] }
 0x7c9   : > { %v1802_v1 = vpop.f32.mrb[8].mxu1 }
 0x7ca   : > { %2137 = vrot.lane.b32.xlu0 %v1802_v1, %s4667_s2  ;;  %v3863_v2 = vpop.f32.mrb[9].mxu1  ;;  %v4028_v1 = vpack.c.bf16 %v3060_v0, %v3059_v62  ;;  %v3703_v62 = vld [vmem:[%s5608_s7] ss:$0 sm:$0xff] }
 0x7cb   : > { %v3061_v2 = vld [vmem:[%s5603_s12 + $0x20] sm:$0xff] }
 0x7cd   : > { %v1967_v3 = vpop.f32.mrb[10].mxu1 }
 0x7ce   : > { %2141 = vrot.lane.b32.xlu1 %v1967_v3, %s4668_s14  ;;  %v3873_v4 = vpop.f32.mrb[11].mxu1  ;;  %v3062_v3 = vld [vmem:[%s5603_s12 + $0x28] sm:$0xff] }
 0x7cf   : > { %v4032_v4 = vpack.c.bf16 %v3062_v3, %v3061_v2 }
 0x806   : > { %v2132_v10 = vpop.f32.mrb[12].mxu1 }
 0x807   : > { %2145 = vrot.lane.b32.xlu1 %v2132_v10, %s4669_s0  ;;  %v3883_v13 = vpop.f32.mrb[13].mxu1 }
 0x808   : > { %v3694_v13 = vld [vmem:[%s5604_s27] ss:$0 sm:$0xff] }
 0x80a   : > { %v2310_v14 = vpop.f32.mrb[14].mxu1 }
 0x80b   : > { %v3893_v15 = vpop.f32.mrb[15].mxu1 }
 0x80c   : > { %v3695_v15 = vld [vmem:[%s5605_s25] ss:$0 sm:$0xff] }
 0x80e   : > { %v2476_v16 = vpop.f32.mrb[16].mxu1 }
 0x80f   : > { %2811 = vrot.lane.b32.xlu0 %v2476_v16, %s4667_s2  ;;  %v3903_v17 = vpop.f32.mrb[17].mxu1 }
 0x812   : > { %v2641_v18 = vpop.f32.mrb[18].mxu1 }
 0x813   : > { %2815 = vrot.lane.b32.xlu0 %v2641_v18, %s4668_s14  ;;  %v3913_v19 = vpop.f32.mrb[19].mxu1  ;;  %s5610_s14 = sld [smem:[#allocation36_spill]] }
 0x816   : > { %v2806_v20 = vpop.f32.mrb[20].mxu1 }
 0x817   : > { %2819 = vrot.lane.b32.xlu1 %v2806_v20, %s4669_s0  ;;  %v3923_v21 = vpop.f32.mrb[21].mxu1 }
 0x83c   : > { %v2138_v22 = vpop.permute.xlu0 %2137 }
 0x83d   : > { %v2148_v23 = vsel %vm1479_vm2, %v1636_v63, %v2138_v22  ;;  %v4024_v63 = vpack.c.bf16 %v3058_v60, %v3057_v58  ;;  %v3063_v22 = vld [vmem:[%s5603_s12 + $0x30] sm:$0xff] }
 0x83f   : > { %4025 = vmatprep.subr.bf16.mxu0 %v4024_v63 }
 0x840   : > { %v2142_v12 = vpop.permute.xlu1 %2141 }
 0x841   : > { %v2150_v24 = vsel %vm2149_vm3, %v2148_v23, %v2142_v12  ;;  %v3064_v12 = vld [vmem:[%s5603_s12 + $0x38] sm:$0xff] }
 0x842   : > { %v4036_v23 = vpack.c.bf16 %v3064_v12, %v3063_v22 }
 0x879   : > { %v2146_v25 = vpop.permute.xlu1 %2145 }
 0x87a   : > { %v2152_v26 = vsel %vm2151_vm4, %v2150_v24, %v2146_v25  ;;  %v3696_v24 = vld [vmem:[#allocation18] ss:$0 sm:$0xff] }
 0x87b   : > { %3932 = vmatprep.mubr.msk.f32.mxu0 %vm1085_vm0, %v2152_v26 }
 0x881   : > { %v2812_v27 = vpop.permute.xlu0 %2811 }
 0x882   : > { %v2822_v29 = vsel %vm1479_vm2, %v2310_v14, %v2812_v27 }
 0x885   : > { %v2816_v28 = vpop.permute.xlu0 %2815 }
 0x886   : > { %v2823_v30 = vsel %vm2149_vm3, %v2822_v29, %v2816_v28 }
 0x889   : > { %v2820_v31 = vpop.permute.xlu1 %2819 }
 0x88a   : > { %v2824_v32 = vsel %vm2151_vm4, %v2823_v30, %v2820_v31  ;;  %v3699_v31 = vld [vmem:[%s5606_s26] ss:$0 sm:$0xff]  ;;  %s1061_s26 = scalar_lea.vmem %s5611_s16, %s5623_s10 }
 0x88b   : > { %3933 = vmatmul.mubr.msk.f32.vlgmr.msra.gmra.mrb[18].mxu0 %vm1085_vm0, %v2824_v32 }
 0x88c   : > { %4027 = vmatpush3.bf16.msra.mxu0 %v4024_v63 }
 0x88d   : > { %4029 = vmatprep.subr.bf16.mxu0 %v4028_v1 }
 0x890   : > { %4031 = vmatpush3.bf16.msra.mxu0 %v4028_v1 }
 0x891   : > { %4033 = vmatprep.subr.bf16.mxu0 %v4032_v4 }
 0x894   : > { %4035 = vmatpush3.bf16.msra.mxu0 %v4032_v4 }
 0x895   : > { %4037 = vmatprep.subr.bf16.mxu0 %v4036_v23 }
 0x898   : > { %4039 = vmatpush3.bf16.msra.mxu0 %v4036_v23 }
 0x95e   : > { %v3934_v34 = vpop.f32.mrb[18].mxu0 }
 0x95f   : > { %v2914_v35 = vadd.f32 %v3934_v34, %v3691_v33  ;;  %v2908_v36 = vpop.f32.mrb[19].mxu0 }
 0x960   : > { %v2909_v37 = vadd.f32 %v3691_v33, %v2908_v36 }
 0x961   : > { %v2918_v38 = vadd.f32 %v2914_v35, %v5238_v59 }
 0x962   : > { %v2917_v39 = vadd.f32 %v2909_v37, %v5232_v55 }
 0x963   : > { %v2924_v40 = vsel %vm1085_vm0, %v2918_v38, 0.0 }
 0x964   : > { %2925 = vadd.xlane.f32.xlu1 %v2924_v40  ;;  %v2921_v41 = vsel %vm1085_vm0, %v2917_v39, 0.0 }
 0x965   : > { %2922 = vadd.xlane.f32.xlu0 %v2921_v41 }
 0x9f1   : > { %v2926_v42 = vpop.xlane.xlu1 %2925 }
 0x9f2   : > { %v2928_v43 = vmul.f32 0.03125, %v2926_v42  ;;  %v2923_v44 = vpop.xlane.xlu0 %2922 }
 0x9f3   : > { %v2927_v45 = vmul.f32 0.03125, %v2923_v44 }
 0x9f4   : > { %v2930_v46 = vsub.f32 %v2918_v38, %v2928_v43 }
 0x9f5   : > { %v2929_v47 = vsub.f32 %v2917_v39, %v2927_v45 }
 0x9f6   : > { %v2932_v50 = vmul.f32 %v2930_v46, %v2930_v46 }
 0x9f7   : > { %v2931_v48 = vmul.f32 %v2929_v47, %v2929_v47 }
 0x9f8   : > { %v2936_v51 = vsel %vm1085_vm0, %v2932_v50, 0.0 }
 0x9f9   : > { %v2933_v49 = vsel %vm1085_vm0, %v2931_v48, 0.0 }
 0x9fa   : > { %2934 = vadd.xlane.f32.xlu0 %v2933_v49 }
 0x9fe   : > { %2937 = vadd.xlane.f32.xlu0 %v2936_v51 }
 0xa87   : > { %v2935_v5 = vpop.xlane.xlu0 %2934 }
 0xa88   : > { %v2939_v6 = vmul.f32 0.03125, %v2935_v5 }
 0xa8a   : > { %v2941_v7 = vadd.f32 1e-05, %v2939_v6 }
 0xa8b   : > { %v2938_v61 = vpop.xlane.xlu0 %2937 }
 0xa8c   : > { %4245 = vrsqrt.f32 %v2941_v7  ;;  %v2940_v8 = vmul.f32 0.03125, %v2938_v61 }
 0xa8e   : > { %v2942_v10 = vadd.f32 1e-05, %v2940_v8 }
 0xa90   : > { %4247 = vrsqrt.f32 %v2942_v10 }
 0xa96   : > { %v4246_v11 = vpop.eup %4245 }
 0xa97   : > { %v2945_v14 = vmul.f32 %v4246_v11, %v2929_v47 }
 0xa99   : > { %v2953_v16 = vmul.f32 %v3694_v13, %v2945_v14 }
 0xa9a   : > { %v4248_v17 = vpop.eup %4247 }
 0xa9b   : > { %v2946_v18 = vmul.f32 %v4248_v17, %v2930_v46  ;;  %v2961_v19 = vadd.f32 %v3695_v15, %v2953_v16  ;;  %v3246_v17 = vld [vmem:[%s5180_s21] sm:$0xff] }
 0xa9d   : > { %v2954_v20 = vmul.f32 %v3694_v13, %v2946_v18  ;;  %3943 = vmatprep.mubr.msk.f32.mxu1 %vm1085_vm0, %v2961_v19  ;;  %v3247_v18 = vld [vmem:[%s5180_s21 + $0x8] sm:$0xff] }
 0xa9f   : > { %v2962_v21 = vadd.f32 %v3695_v15, %v2954_v20  ;;  %v3248_v20 = vld [vmem:[%s5180_s21 + $0x10] sm:$0xff] }
 0xaa1   : > { %3944 = vmatmul.mubr.msk.f32.vlgmr.msra.gmra.mrb[22].mxu1 %vm1085_vm0, %v2962_v21 }
 0xb74   : > { %v3945_v25 = vpop.f32.mrb[22].mxu1 }
 0xb75   : > { %v3052_v26 = vadd.f32 %v3945_v25, %v3696_v24  ;;  %v3046_v27 = vpop.f32.mrb[23].mxu1 }
 0xb76   : > { %v3047_v28 = vadd.f32 %v3696_v24, %v3046_v27 }
 0xb77   : > { %v3056_v30 = vmax.f32 %v3052_v26, 0.0 }
 0xb78   : > { %v3055_v29 = vmax.f32 %v3047_v28, 0.0 }
 0xb7a   : > { %3962 = vmatprep.mubr.msk.f32.mxu0 %vm3072_vm5, %v3055_v29  ;;  %v3704_v29 = vld [vmem:[%s5609_s6] ss:$0 sm:$0xff] }
 0xb7b   : > { %3963 = vmatmul.mubr.msk.f32.vlgmr.msra.gmra.mrb[20].mxu0 %vm3072_vm5, %v3056_v30 }
 0xc4e   : > { %v3964_v32 = vpop.f32.mrb[20].mxu0 }
 0xc4f   : > { %v3151_v33 = vadd.f32 %v3964_v32, %v3699_v31  ;;  %v3145_v34 = vpop.f32.mrb[21].mxu0 }
 0xc50   : > { %v3146_v35 = vadd.f32 %v3699_v31, %v3145_v34 }
 0xc51   : > { %v3155_v36 = vadd.f32 %v3151_v33, %v2962_v21  ;;  %v3249_v21 = vld [vmem:[%s5180_s21 + $0x18] sm:$0xff]  ;;  %v3705_v33 = vld [vmem:[%s5610_s14] ss:$0 sm:$0xff]  ;;  %s5614_s21 = sld [smem:[#allocation53_spill]] }
 0xc52   : > { %v3154_v37 = vadd.f32 %v3146_v35, %v2961_v19  ;;  %v4040_v19 = vpack.c.bf16 %v3247_v18, %v3246_v17  ;;  %v4044_v22 = vpack.c.bf16 %v3249_v21, %v3248_v20 }
 0xc53   : > { %v3161_v38 = vsel %vm1085_vm0, %v3155_v36, 0.0 }
 0xc54   : > { %3162 = vadd.xlane.f32.xlu1 %v3161_v38  ;;  %v3158_v39 = vsel %vm1085_vm0, %v3154_v37, 0.0  ;;  %4041 = vmatprep.subr.bf16.mxu1 %v4040_v19  ;;  %v3706_v38 = vld [vmem:[%s1061_s26] ss:$0 sm:$0xff] }
 0xc55   : > { %3159 = vadd.xlane.f32.xlu0 %v3158_v39  ;;  %4043 = vmatpush3.bf16.msra.mxu1 %v4040_v19 }
 0xc56   : > { %4045 = vmatprep.subr.bf16.mxu1 %v4044_v22 }
 0xc57   : > { %s1070_s2 = scalar_lea.vmem %s5614_s21, %s3715_s3 }
 0xc59   : > { %4047 = vmatpush3.bf16.msra.mxu1 %v4044_v22 }
 0xce1   : > { %v3163_v40 = vpop.xlane.xlu1 %3162 }
 0xce2   : > { %v3165_v41 = vmul.f32 0.03125, %v3163_v40  ;;  %v3160_v42 = vpop.xlane.xlu0 %3159 }
 0xce3   : > { %v3164_v43 = vmul.f32 0.03125, %v3160_v42 }
 0xce4   : > { %v3167_v44 = vsub.f32 %v3155_v36, %v3165_v41 }
 0xce5   : > { %v3166_v45 = vsub.f32 %v3154_v37, %v3164_v43 }
 0xce6   : > { %v3169_v46 = vmul.f32 %v3167_v44, %v3167_v44 }
 0xce7   : > { %v3168_v47 = vmul.f32 %v3166_v45, %v3166_v45 }
 0xce8   : > { %v3173_v48 = vsel %vm1085_vm0, %v3169_v46, 0.0 }
 0xce9   : > { %3174 = vadd.xlane.f32.xlu1 %v3173_v48  ;;  %v3170_v49 = vsel %vm1085_vm0, %v3168_v47, 0.0 }
 0xcea   : > { %3171 = vadd.xlane.f32.xlu0 %v3170_v49 }
 0xd76   : > { %v3175_v50 = vpop.xlane.xlu1 %3174 }
 0xd77   : > { %v3177_v51 = vmul.f32 0.03125, %v3175_v50  ;;  %v3172_v52 = vpop.xlane.xlu0 %3171 }
 0xd78   : > { %v3176_v53 = vmul.f32 0.03125, %v3172_v52 }
 0xd79   : > { %v3179_v54 = vadd.f32 1e-05, %v3177_v51 }
 0xd7a   : > { %v3178_v56 = vadd.f32 1e-05, %v3176_v53 }
 0xd7b   : > { %4249 = vrsqrt.f32 %v3179_v54 }
 0xd7c   : > { %4251 = vrsqrt.f32 %v3178_v56 }
 0xd85   : > { %v4250_v57 = vpop.eup %4249 }
 0xd86   : > { %v4252_v58 = vpop.eup %4251  ;;  %v3183_v60 = vmul.f32 %v4250_v57, %v3167_v44 }
 0xd87   : > { %v3182_v63 = vmul.f32 %v4252_v58, %v3166_v45 }
 0xd88   : > { %v3191_v0 = vmul.f32 %v3702_v9, %v3183_v60 }
 0xd89   : > { %v3190_v1 = vmul.f32 %v3702_v9, %v3182_v63 }
 0xd8a   : > { %v3199_v2 = vadd.f32 %v3703_v62, %v3191_v0 }
 0xd8b   : > { %v3198_v3 = vadd.f32 %v3703_v62, %v3190_v1 }
 0xd8c   : > { %v3201_v4 = vadd.f32 %v3199_v2, %v5238_v59  ;;  %v3709_v2 = vld [vmem:[%s5612_s15] ss:$0 sm:$0xff] }
 0xd8d   : > { %v3200_v5 = vadd.f32 %v3198_v3, %v5232_v55 }
 0xd8e   : > { %v3207_v6 = vsel %vm1085_vm0, %v3201_v4, 0.0 }
 0xd8f   : > { %3208 = vadd.xlane.f32.xlu1 %v3207_v6  ;;  %v3204_v7 = vsel %vm1085_vm0, %v3200_v5, 0.0 }
 0xd90   : > { %3205 = vadd.xlane.f32.xlu0 %v3204_v7 }
 0xe1c   : > { %v3209_v61 = vpop.xlane.xlu1 %3208 }
 0xe1d   : > { %v3211_v8 = vmul.f32 0.03125, %v3209_v61  ;;  %v3206_v10 = vpop.xlane.xlu0 %3205 }
 0xe1e   : > { %v3210_v11 = vmul.f32 0.03125, %v3206_v10 }
 0xe1f   : > { %v3213_v13 = vsub.f32 %v3201_v4, %v3211_v8 }
 0xe20   : > { %v3212_v14 = vsub.f32 %v3200_v5, %v3210_v11  ;;  %v3710_v5 = vld [vmem:[%s5613_s23] ss:$0 sm:$0xff] }
 0xe21   : > { %v3215_v15 = vmul.f32 %v3213_v13, %v3213_v13 }
 0xe22   : > { %v3214_v59 = vmul.f32 %v3212_v14, %v3212_v14 }
 0xe23   : > { %v3219_v55 = vsel %vm1085_vm0, %v3215_v15, 0.0 }
 0xe24   : > { %3220 = vadd.xlane.f32.xlu1 %v3219_v55  ;;  %v3216_v16 = vsel %vm1085_vm0, %v3214_v59, 0.0 }
 0xe25   : > { %3217 = vadd.xlane.f32.xlu0 %v3216_v16 }
 0xeb1   : > { %v3221_v12 = vpop.xlane.xlu1 %3220 }
 0xeb2   : > { %v3223_v23 = vmul.f32 0.03125, %v3221_v12  ;;  %v3218_v24 = vpop.xlane.xlu0 %3217 }
 0xeb3   : > { %v3222_v25 = vmul.f32 0.03125, %v3218_v24 }
 0xeb4   : > { %v3225_v26 = vadd.f32 1e-05, %v3223_v23 }
 0xeb5   : > { %v3224_v27 = vadd.f32 1e-05, %v3222_v25 }
 0xeb6   : > { %4253 = vrsqrt.f32 %v3225_v26 }
 0xeb7   : > { %4255 = vrsqrt.f32 %v3224_v27 }
 0xec0   : > { %v4254_v28 = vpop.eup %4253 }
 0xec1   : > { %v4256_v30 = vpop.eup %4255  ;;  %v3229_v31 = vmul.f32 %v4254_v28, %v3213_v13 }
 0xec2   : > { %v3228_v32 = vmul.f32 %v4256_v30, %v3212_v14 }
 0xec3   : > { %v3237_v34 = vmul.f32 %v3704_v29, %v3229_v31 }
 0xec4   : > { %v3236_v35 = vmul.f32 %v3704_v29, %v3228_v32 }
 0xec5   : > { %v3245_v37 = vadd.f32 %v3705_v33, %v3237_v34 }
 0xec6   : > { %v3244_v36 = vadd.f32 %v3705_v33, %v3236_v35 }
 0xec8   : > { %3973 = vmatprep.mubr.msk.f32.mxu1 %vm1085_vm0, %v3244_v36 }
 0xec9   : > { %3974 = vmatmul.mubr.msk.f32.vlgmr.msra.gmra.mrb[24].mxu1 %vm1085_vm0, %v3245_v37 }
 0xf9c   : > { %v3975_v39 = vpop.f32.mrb[24].mxu1 }
 0xf9d   : > { %v3335_v40 = vadd.f32 %v3975_v39, %v3706_v38  ;;  %v3329_v41 = vpop.f32.mrb[25].mxu1 }
 0xf9e   : > { %v3330_v42 = vadd.f32 %v3706_v38, %v3329_v41 }
 0xf9f   : > { %v3339_v43 = vadd.f32 %v3335_v40, %v3245_v37 }
 0xfa0   : > { %v3338_v44 = vadd.f32 %v3330_v42, %v3244_v36 }
 0xfa1   : > { %v3345_v45 = vsel %vm1085_vm0, %v3339_v43, 0.0 }
 0xfa2   : > { %3346 = vadd.xlane.f32.xlu1 %v3345_v45  ;;  %v3342_v46 = vsel %vm1085_vm0, %v3338_v44, 0.0 }
 0xfa3   : > { %3343 = vadd.xlane.f32.xlu0 %v3342_v46 }
0x102f   : > { %v3347_v47 = vpop.xlane.xlu1 %3346 }
0x1030   : > { %v3349_v48 = vmul.f32 0.03125, %v3347_v47  ;;  %v3344_v49 = vpop.xlane.xlu0 %3343 }
0x1031   : > { %v3348_v50 = vmul.f32 0.03125, %v3344_v49 }
0x1032   : > { %v3351_v51 = vsub.f32 %v3339_v43, %v3349_v48 }
0x1033   : > { %v3350_v52 = vsub.f32 %v3338_v44, %v3348_v50 }
0x1034   : > { %v3353_v53 = vmul.f32 %v3351_v51, %v3351_v51 }
0x1035   : > { %v3352_v54 = vmul.f32 %v3350_v52, %v3350_v52 }
0x1036   : > { %v3357_v56 = vsel %vm1085_vm0, %v3353_v53, 0.0 }
0x1037   : > { %3358 = vadd.xlane.f32.xlu1 %v3357_v56  ;;  %v3354_v57 = vsel %vm1085_vm0, %v3352_v54, 0.0 }
0x1038   : > { %3355 = vadd.xlane.f32.xlu0 %v3354_v57 }
0x10c4   : > { %v3359_v9 = vpop.xlane.xlu1 %3358 }
0x10c5   : > { %v3361_v58 = vmul.f32 0.03125, %v3359_v9  ;;  %v3356_v60 = vpop.xlane.xlu0 %3355 }
0x10c6   : > { %v3360_v62 = vmul.f32 0.03125, %v3356_v60 }
0x10c7   : > { %v3363_v63 = vadd.f32 1e-05, %v3361_v58 }
0x10c8   : > { %v3362_v0 = vadd.f32 1e-05, %v3360_v62 }
0x10c9   : > { %4257 = vrsqrt.f32 %v3363_v63 }
0x10ca   : > { %4259 = vrsqrt.f32 %v3362_v0 }
0x10d3   : > { %v4258_v1 = vpop.eup %4257 }
0x10d4   : > { %v4260_v3 = vpop.eup %4259  ;;  %v3367_v4 = vmul.f32 %v4258_v1, %v3351_v51 }
0x10d5   : > { %v3366_v6 = vmul.f32 %v4260_v3, %v3350_v52 }
0x10d6   : > { %v3375_v7 = vmul.f32 %v3709_v2, %v3367_v4 }
0x10d7   : > { %v3374_v61 = vmul.f32 %v3709_v2, %v3366_v6 }
0x10d8   : > { %v3383_v8 = vadd.f32 %v3710_v5, %v3375_v7 }
0x10d9   : > { %v3382_v10 = vadd.f32 %v3710_v5, %v3374_v61 }
0x10da   : > { %3385 = vst.msk [vmem:[%s1070_s2 + $0x8] sm:$0xff] %vm1085_vm0, %v3383_v8 }
0x10db   : > { %3384 = vst.msk [vmem:[%s1070_s2] sm:$0xff] %vm1085_vm0, %v3382_v10 }
0x10dc PF: > { %s47_s5 = sadd.s32 1, %s4647_s5   ;;  %s5615_s7 = smov %s4631_s4 }
0x10dd   : > { %p44_p12 = scmp.ge.s32.totalorder %s47_s5, 7   ;;  %s5616_s4 = smov %s4635_s8 }
0x10de   : > { %s5617_s8 = smov %s5084_s28  ;;  %s5618_s30 = smov %s4643_s9 }
0x10df   : > { %s5619_s9 = smov %s5621_s19  ;;  %46 = sbr.rel (!%p44_p12) target bundleno = 37 (0x25), region = 226 }
0x10e6   :  { %3416 = vsyncpa [#allocation3], 1 }
0x10e7   :  { %3418 = vsyncpa [#allocation3 + $0x1], 1 }
0x10e8   :  { %3419 = vsyncpa [#allocation5], 1 }
0x10e9   :  { %3421 = vsyncpa [#allocation5 + $0x1], 1 }
0x10ea   :  { %3422 = vsyncpa [#allocation8], 1 }
0x10eb   :  { %3423 = vsyncpa [#allocation11], 1 }
0x10ec   :  { %3424 = vsyncpa [#allocation14], 1 }
0x10ed   :  { %3425 = vsyncpa [#allocation17], 1 }

</bundles_post_ra>
